<compile_context>
chip_gen: v5e
topology: v5e:2x2
jax: 0.10.0
libtpu: 0.0.40
codegen_flags: <defaults>
</compile_context>

<pallas_src>
import functools

import jax
import jax.numpy as jnp
from jax import lax
from jax.experimental import pallas as pl
from jax.experimental.pallas import tpu as pltpu

EPS = 1e-5  # nn.InstanceNorm2d default


def _round_up(a, b):
    return (a + b - 1) // b * b


def _pick_div(n, cap):
    """Largest multiple-of-8 divisor of n that is <= cap; falls back to n."""
    best = None
    d = 8
    while d <= min(n, cap):
        if n % d == 0:
            best = d
        d += 8
    return best if best is not None else n


# --------------------------------------------------------------------------
# Sweep 1: 3x3 conv + per-channel InstanceNorm statistics.
# --------------------------------------------------------------------------
def _conv_stats_kernel(x_ref, w_ref, m_ref, y_ref, mean_ref, rstd_ref,
                       sum_sc, ssq_sc, *, wp, hw_true, eps):
    # x_ref:    (1, 1, Cin, (Th+2)*Wp) bf16  flattened padded row-chunk (halo incl.)
    # w_ref:    (3, 3, Cout_t, Cin)    bf16  conv weight, tap-major
    # m_ref:    (1, 1, Th*Wp)          f32   validity mask (1 inside HxW, 0 on pads)
    # y_ref:    (1, Cout_t, Th*Wp)     f32   raw conv tile (padded-flat layout)
    # mean_ref: (1, Cout_t, 1)         f32   per-(image,channel) mean
    # rstd_ref: (1, Cout_t, 1)         f32   per-(image,channel) 1/sqrt(var+eps)
    # sum_sc / ssq_sc: (Cout_t, 1)     f32   running sums across row tiles
    r = pl.program_id(2)
    thwp = y_ref.shape[2]

    # 3x3 conv = 9 MXU matmuls over lane-aligned row slices of the flat chunk.
    # Group by kernel column dx: each group is summed in f32 and lane-shifted
    # once so all taps align on the output column; the wrapped tail of the
    # roll only lands on junk pad columns.
    z = None
    for dx in range(3):
        zdx = None
        for dy in range(3):
            xd = x_ref[0, 0, :, dy * wp: dy * wp + thwp]        # (Cin, Th*Wp)
            part = jnp.dot(w_ref[dy, dx], xd,
                           preferred_element_type=jnp.float32)  # (Cout_t, Th*Wp)
            zdx = part if zdx is None else zdx + part
        if dx:
            # out[p] = zdx[p + dx]  (shift-left by dx == roll by thwp - dx)
            zdx = pltpu.roll(zdx, shift=thwp - dx, axis=1)
        z = zdx if z is None else z + zdx

    @pl.when(r == 0)
    def _():
        sum_sc[...] = jnp.zeros_like(sum_sc)
        ssq_sc[...] = jnp.zeros_like(ssq_sc)

    # One-pass InstanceNorm statistics; pad rows/columns are masked out.
    m = m_ref[0]                                     # (1, Th*Wp)
    zm = z * m
    sum_sc[...] += jnp.sum(zm, axis=-1, keepdims=True)
    ssq_sc[...] += jnp.sum(zm * z, axis=-1, keepdims=True)

    # Lane-dense store of the raw conv tile (nothing image-sized stays resident).
    y_ref[0] = z

    @pl.when(r == pl.num_programs(2) - 1)
    def _():
        inv_n = 1.0 / hw_true
        mu = sum_sc[...] * inv_n
        # TODO(synk): E[x^2] - mu^2 in f32 can lose precision for large means;
        # a shifted / two-pass variance would be needed for tighter parity.
        var = jnp.maximum(ssq_sc[...] * inv_n - mu * mu, 0.0)
        mean_ref[0] = mu
        rstd_ref[0] = lax.rsqrt(var + eps)


# --------------------------------------------------------------------------
# Sweep 2: normalize + ReLU, tile-by-tile, stripping the lane padding.
# --------------------------------------------------------------------------
def _norm_relu_kernel(y_ref, mean_ref, rstd_ref, o_ref):
    # y_ref:    (1, Cout_t2, Th, Wp) f32   raw conv
    # mean_ref: (1, Cout_t2, 1)      f32
    # rstd_ref: (1, Cout_t2, 1)      f32
    # o_ref:    (1, Cout_t2, Th, W)  f32
    w = o_ref.shape[3]
    x = y_ref[0, :, :, :w]
    mu = mean_ref[0][:, :, None]
    rs = rstd_ref[0][:, :, None]
    o_ref[0] = jnp.maximum((x - mu) * rs, 0.0)


# --------------------------------------------------------------------------
# Wrapper
# --------------------------------------------------------------------------
def single_conv(x_nchw, weight_oihw, *, conv_dtype=jnp.bfloat16,
                vmem_budget_bytes=20 * 1024 * 1024):
    """Forward pass of SingleConv.

    x_nchw:      (N, Cin, H, W)    float32
    weight_oihw: (Cout, Cin, 3, 3) float32 (PyTorch Conv2d layout)
    returns:     (N, Cout, H, W)   float32
    """
    N, Cin, H, W = x_nchw.shape
    Cout = weight_oihw.shape[0]

    # Lane-padded width: keeps every tap slice / store lane-aligned.
    Wp = _round_up(W + 2, 128)

    # ---- tile selection under an explicit VMEM budget ----------------------
    def est_bytes(th, ct):
        chunk = 2 * Cin * (th + 2) * Wp * 2      # double-buffered bf16 input chunk
        ytile = 2 * ct * th * Wp * 4             # double-buffered f32 conv tile
        wght = 2 * 9 * ct * Cin * 2              # double-buffered weights
        mask = 2 * th * Wp * 4
        temps = 3 * ct * th * Wp * 4             # in-kernel f32 accumulators
        return chunk + ytile + wght + mask + temps + (1 << 20)

    H8 = _round_up(H, 8)
    cand = [t for t in range(8, min(64, H8) + 1, 8) if H8 % t == 0]

    ct = _pick_div(Cout, 256)
    Th = None
    while True:
        Th = None
        for t in cand:                            # ascending -> keeps the largest fit
            if est_bytes(t, ct) <= vmem_budget_bytes:
                Th = t
        if Th is not None:
            break
        new_ct = _pick_div(Cout, max(8, ct // 2))
        if new_ct == ct:
            Th = 8
            break
        ct = new_ct

    Hp = _round_up(H, Th)
    nrt = Hp // Th
    thwp = Th * Wp
    n_ct = Cout // ct
    vmem_limit = int(min(max(2 * est_bytes(Th, ct), 32 << 20), 64 << 20))

    # ---- wrapper-side prep (cast to bf16 BEFORE padding / chunking) --------
    x_bf = x_nchw.astype(conv_dtype)
    xp = jnp.pad(x_bf, ((0, 0), (0, 0), (1, Hp + 1 - H), (1, Wp - W - 1)))
    # Row tiles with a 2-row halo, rows flattened so every in-kernel tap slice
    # is lane-aligned.  ~(Th+2)/Th x the raw bytes instead of the 9x im2col.
    chunks = jnp.stack(
        [xp[:, :, r * Th: r * Th + Th + 2, :] for r in range(nrt)], axis=1)
    chunks = chunks.reshape(N, nrt, Cin, (Th + 2) * Wp)

    # (Cout, Cin, 3, 3) -> (3, 3, Cout, Cin): w9[dy, dx] is the (Cout, Cin) tap.
    w9 = jnp.transpose(weight_oihw, (2, 3, 0, 1)).astype(conv_dtype)

    # Validity mask over the padded-flat pixel space (for the statistics).
    valid = ((jnp.arange(Hp) < H)[:, None] & (jnp.arange(Wp) < W)[None, :])
    valid = valid.astype(jnp.float32).reshape(nrt, 1, thwp)

    kern1 = functools.partial(_conv_stats_kernel, wp=Wp, hw_true=float(H * W),
                              eps=EPS)

    y_raw, mean, rstd = pl.pallas_call(
        kern1,
        out_shape=(
            jax.ShapeDtypeStruct((N, Cout, Hp * Wp), jnp.float32),
            jax.ShapeDtypeStruct((N, Cout, 1), jnp.float32),
            jax.ShapeDtypeStruct((N, Cout, 1), jnp.float32),
        ),
        grid_spec=pltpu.PrefetchScalarGridSpec(
            num_scalar_prefetch=0,
            grid=(N, n_ct, nrt),
            in_specs=[
                pl.BlockSpec((1, 1, Cin, (Th + 2) * Wp),
                             lambda n, c, r: (n, r, 0, 0)),
                # Grid-invariant along r (only refetched when the Cout tile
                # changes); pl.Buffered(1) would save one copy of VMEM.
                pl.BlockSpec((3, 3, ct, Cin), lambda n, c, r: (0, 0, c, 0)),
                pl.BlockSpec((1, 1, thwp), lambda n, c, r: (r, 0, 0)),
            ],
            out_specs=[
                pl.BlockSpec((1, ct, thwp), lambda n, c, r: (n, c, r)),
                pl.BlockSpec((1, ct, 1), lambda n, c, r: (n, c, 0)),
                pl.BlockSpec((1, ct, 1), lambda n, c, r: (n, c, 0)),
            ],
            scratch_shapes=[
                pltpu.VMEM((ct, 1), jnp.float32),   # running sum
                pltpu.VMEM((ct, 1), jnp.float32),   # running sum of squares
            ],
        ),
        compiler_params=pltpu.CompilerParams(
            dimension_semantics=("parallel", "parallel", "arbitrary"),
            vmem_limit_bytes=vmem_limit),
    )(chunks, w9, valid)

    # ---- sweep 2: per-tile normalize + ReLU, strip lane padding ------------
    ct2 = _pick_div(Cout, 64)
    n_ct2 = Cout // ct2
    y4 = y_raw.reshape(N, Cout, Hp, Wp)

    out = pl.pallas_call(
        _norm_relu_kernel,
        out_shape=jax.ShapeDtypeStruct((N, Cout, Hp, W), jnp.float32),
        grid_spec=pltpu.PrefetchScalarGridSpec(
            num_scalar_prefetch=0,
            grid=(N, n_ct2, nrt),
            in_specs=[
                pl.BlockSpec((1, ct2, Th, Wp), lambda n, c, r: (n, c, r, 0)),
                pl.BlockSpec((1, ct2, 1), lambda n, c, r: (n, c, 0)),
                pl.BlockSpec((1, ct2, 1), lambda n, c, r: (n, c, 0)),
            ],
            out_specs=pl.BlockSpec((1, ct2, Th, W),
                                   lambda n, c, r: (n, c, r, 0)),
        ),
        compiler_params=pltpu.CompilerParams(
            dimension_semantics=("parallel", "parallel", "parallel"),
            vmem_limit_bytes=32 * 1024 * 1024),
    )(y4, mean, rstd)

    return out[:, :, :H, :]


# --------------------------------------------------------------------------
# Pure-JAX reference
# --------------------------------------------------------------------------
def _reference(x_nchw, weight_oihw, conv_dtype=None):
    x, w = x_nchw, weight_oihw
    if conv_dtype is not None:
        x = x.astype(conv_dtype)
        w = w.astype(conv_dtype)
    y = lax.conv_general_dilated(
        x, w, window_strides=(1, 1), padding=((1, 1), (1, 1)),
        dimension_numbers=("NCHW", "OIHW", "NCHW"),
        preferred_element_type=jnp.float32)
    mean = jnp.mean(y, axis=(2, 3), keepdims=True)
    var = jnp.mean((y - mean) ** 2, axis=(2, 3), keepdims=True)
    y = (y - mean) * lax.rsqrt(var + EPS)
    return jnp.maximum(y, 0.0)


if __name__ == "__main__":
    key = jax.random.PRNGKey(0)

    def run_case(n, cin, cout, h, w_, kx, kw):
        x = jax.random.normal(kx, (n, cin, h, w_), dtype=jnp.float32)
        w = jax.random.normal(kw, (cout, cin, 3, 3), dtype=jnp.float32) * 0.1
        out = jax.block_until_ready(single_conv(x, w))
        assert out.shape == (n, cout, h, w_)
        ref_matched = _reference(x, w, conv_dtype=jnp.bfloat16)
        ref_f32 = _reference(x, w)
        err = float(jnp.max(jnp.abs(out - ref_matched)))
        assert jnp.allclose(out, ref_matched, atol=3e-3, rtol=3e-3), err
        assert jnp.allclose(out, ref_f32, atol=1e-1, rtol=1e-1)

    k1, k2, k3, k4 = jax.random.split(key, 4)
    run_case(2, 4, 8, 16, 16, k1, k2)    # small aligned case
    run_case(1, 8, 16, 20, 20, k3, k4)   # non-multiple H/W exercises row/col masking
    print("KERNEL_OK")
</pallas_src>

<mosaic_0001>
module attributes {stable_mosaic.version = 11 : i64} {
  func.func @_conv_stats_kernel(%arg0: i32, %arg1: i32, %arg2: i32, %arg3: memref<1x1x4x2304xbf16, #tpu.memory_space<vmem>>, %arg4: memref<3x3x8x4xbf16, #tpu.memory_space<vmem>>, %arg5: memref<1x1x2048xf32, #tpu.memory_space<vmem>>, %arg6: memref<1x8x2048xf32, #tpu.memory_space<vmem>>, %arg7: memref<1x8x1xf32, #tpu.memory_space<vmem>>, %arg8: memref<1x8x1xf32, #tpu.memory_space<vmem>>, %arg9: memref<8x1xf32, #tpu.memory_space<vmem>>, %arg10: memref<8x1xf32, #tpu.memory_space<vmem>>) attributes {dimension_semantics = [#tpu.dimension_semantics<parallel>, #tpu.dimension_semantics<parallel>, #tpu.dimension_semantics<arbitrary>], iteration_bounds = array<i64: 2, 1, 1>, scalar_prefetch = 0 : i64, scratch_operands = 2 : i64, tpu.core_type = #tpu.core_type<tc>, window_params = [{transform_indices = @transform_0, window_bounds = array<i64: 1, 1, 4, 2304>}, {transform_indices = @transform_1, window_bounds = array<i64: 3, 3, 8, 4>}, {transform_indices = @transform_2, window_bounds = array<i64: 1, 1, 2048>}, {transform_indices = @transform_3, window_bounds = array<i64: 1, 8, 2048>}, {transform_indices = @transform_4, window_bounds = array<i64: 1, 8, 1>}, {transform_indices = @transform_5, window_bounds = array<i64: 1, 8, 1>}]} {
    %c0 = arith.constant 0 : index
    %c0_0 = arith.constant 0 : index
    %c0_1 = arith.constant 0 : index
    %c0_2 = arith.constant 0 : index
    %0 = vector.load %arg3[%c0, %c0_0, %c0_1, %c0_2] : memref<1x1x4x2304xbf16, #tpu.memory_space<vmem>>, vector<1x1x4x2048xbf16>
    %1 = vector.shape_cast %0 : vector<1x1x4x2048xbf16> to vector<4x2048xbf16>
    %c0_3 = arith.constant 0 : index
    %c0_4 = arith.constant 0 : index
    %c0_5 = arith.constant 0 : index
    %c0_6 = arith.constant 0 : index
    %2 = vector.load %arg4[%c0_3, %c0_4, %c0_5, %c0_6] : memref<3x3x8x4xbf16, #tpu.memory_space<vmem>>, vector<1x1x8x4xbf16>
    %3 = vector.shape_cast %2 : vector<1x1x8x4xbf16> to vector<8x4xbf16>
    %cst = arith.constant dense<0.000000e+00> : vector<8x2048xf32>
    %4 = tpu.matmul %3, %1, %cst {dimension_numbers = #tpu.dot_dimension_numbers<[1], [0], [0], [1], [0, 0, 1, 1], [], []>} : vector<8x4xbf16>, vector<4x2048xbf16>, vector<8x2048xf32> -> vector<8x2048xf32>
    %c0_7 = arith.constant 0 : index
    %c0_8 = arith.constant 0 : index
    %c0_9 = arith.constant 0 : index
    %c128 = arith.constant 128 : index
    %5 = vector.load %arg3[%c0_7, %c0_8, %c0_9, %c128] : memref<1x1x4x2304xbf16, #tpu.memory_space<vmem>>, vector<1x1x4x2048xbf16>
    %6 = vector.shape_cast %5 : vector<1x1x4x2048xbf16> to vector<4x2048xbf16>
    %c1 = arith.constant 1 : index
    %c0_10 = arith.constant 0 : index
    %c0_11 = arith.constant 0 : index
    %c0_12 = arith.constant 0 : index
    %7 = vector.load %arg4[%c1, %c0_10, %c0_11, %c0_12] : memref<3x3x8x4xbf16, #tpu.memory_space<vmem>>, vector<1x1x8x4xbf16>
    %8 = vector.shape_cast %7 : vector<1x1x8x4xbf16> to vector<8x4xbf16>
    %cst_13 = arith.constant dense<0.000000e+00> : vector<8x2048xf32>
    %9 = tpu.matmul %8, %6, %cst_13 {dimension_numbers = #tpu.dot_dimension_numbers<[1], [0], [0], [1], [0, 0, 1, 1], [], []>} : vector<8x4xbf16>, vector<4x2048xbf16>, vector<8x2048xf32> -> vector<8x2048xf32>
    %10 = arith.addf %4, %9 : vector<8x2048xf32>
    %c0_14 = arith.constant 0 : index
    %c0_15 = arith.constant 0 : index
    %c0_16 = arith.constant 0 : index
    %c256 = arith.constant 256 : index
    %11 = vector.load %arg3[%c0_14, %c0_15, %c0_16, %c256] : memref<1x1x4x2304xbf16, #tpu.memory_space<vmem>>, vector<1x1x4x2048xbf16>
    %12 = vector.shape_cast %11 : vector<1x1x4x2048xbf16> to vector<4x2048xbf16>
    %c2 = arith.constant 2 : index
    %c0_17 = arith.constant 0 : index
    %c0_18 = arith.constant 0 : index
    %c0_19 = arith.constant 0 : index
    %13 = vector.load %arg4[%c2, %c0_17, %c0_18, %c0_19] : memref<3x3x8x4xbf16, #tpu.memory_space<vmem>>, vector<1x1x8x4xbf16>
    %14 = vector.shape_cast %13 : vector<1x1x8x4xbf16> to vector<8x4xbf16>
    %cst_20 = arith.constant dense<0.000000e+00> : vector<8x2048xf32>
    %15 = tpu.matmul %14, %12, %cst_20 {dimension_numbers = #tpu.dot_dimension_numbers<[1], [0], [0], [1], [0, 0, 1, 1], [], []>} : vector<8x4xbf16>, vector<4x2048xbf16>, vector<8x2048xf32> -> vector<8x2048xf32>
    %16 = arith.addf %10, %15 : vector<8x2048xf32>
    %c0_21 = arith.constant 0 : index
    %c0_22 = arith.constant 0 : index
    %c0_23 = arith.constant 0 : index
    %c0_24 = arith.constant 0 : index
    %17 = vector.load %arg3[%c0_21, %c0_22, %c0_23, %c0_24] : memref<1x1x4x2304xbf16, #tpu.memory_space<vmem>>, vector<1x1x4x2048xbf16>
    %18 = vector.shape_cast %17 : vector<1x1x4x2048xbf16> to vector<4x2048xbf16>
    %c0_25 = arith.constant 0 : index
    %c1_26 = arith.constant 1 : index
    %c0_27 = arith.constant 0 : index
    %c0_28 = arith.constant 0 : index
    %19 = vector.load %arg4[%c0_25, %c1_26, %c0_27, %c0_28] : memref<3x3x8x4xbf16, #tpu.memory_space<vmem>>, vector<1x1x8x4xbf16>
    %20 = vector.shape_cast %19 : vector<1x1x8x4xbf16> to vector<8x4xbf16>
    %cst_29 = arith.constant dense<0.000000e+00> : vector<8x2048xf32>
    %21 = tpu.matmul %20, %18, %cst_29 {dimension_numbers = #tpu.dot_dimension_numbers<[1], [0], [0], [1], [0, 0, 1, 1], [], []>} : vector<8x4xbf16>, vector<4x2048xbf16>, vector<8x2048xf32> -> vector<8x2048xf32>
    %c0_30 = arith.constant 0 : index
    %c0_31 = arith.constant 0 : index
    %c0_32 = arith.constant 0 : index
    %c128_33 = arith.constant 128 : index
    %22 = vector.load %arg3[%c0_30, %c0_31, %c0_32, %c128_33] : memref<1x1x4x2304xbf16, #tpu.memory_space<vmem>>, vector<1x1x4x2048xbf16>
    %23 = vector.shape_cast %22 : vector<1x1x4x2048xbf16> to vector<4x2048xbf16>
    %c1_34 = arith.constant 1 : index
    %c1_35 = arith.constant 1 : index
    %c0_36 = arith.constant 0 : index
    %c0_37 = arith.constant 0 : index
    %24 = vector.load %arg4[%c1_34, %c1_35, %c0_36, %c0_37] : memref<3x3x8x4xbf16, #tpu.memory_space<vmem>>, vector<1x1x8x4xbf16>
    %25 = vector.shape_cast %24 : vector<1x1x8x4xbf16> to vector<8x4xbf16>
    %cst_38 = arith.constant dense<0.000000e+00> : vector<8x2048xf32>
    %26 = tpu.matmul %25, %23, %cst_38 {dimension_numbers = #tpu.dot_dimension_numbers<[1], [0], [0], [1], [0, 0, 1, 1], [], []>} : vector<8x4xbf16>, vector<4x2048xbf16>, vector<8x2048xf32> -> vector<8x2048xf32>
    %27 = arith.addf %21, %26 : vector<8x2048xf32>
    %c0_39 = arith.constant 0 : index
    %c0_40 = arith.constant 0 : index
    %c0_41 = arith.constant 0 : index
    %c256_42 = arith.constant 256 : index
    %28 = vector.load %arg3[%c0_39, %c0_40, %c0_41, %c256_42] : memref<1x1x4x2304xbf16, #tpu.memory_space<vmem>>, vector<1x1x4x2048xbf16>
    %29 = vector.shape_cast %28 : vector<1x1x4x2048xbf16> to vector<4x2048xbf16>
    %c2_43 = arith.constant 2 : index
    %c1_44 = arith.constant 1 : index
    %c0_45 = arith.constant 0 : index
    %c0_46 = arith.constant 0 : index
    %30 = vector.load %arg4[%c2_43, %c1_44, %c0_45, %c0_46] : memref<3x3x8x4xbf16, #tpu.memory_space<vmem>>, vector<1x1x8x4xbf16>
    %31 = vector.shape_cast %30 : vector<1x1x8x4xbf16> to vector<8x4xbf16>
    %cst_47 = arith.constant dense<0.000000e+00> : vector<8x2048xf32>
    %32 = tpu.matmul %31, %29, %cst_47 {dimension_numbers = #tpu.dot_dimension_numbers<[1], [0], [0], [1], [0, 0, 1, 1], [], []>} : vector<8x4xbf16>, vector<4x2048xbf16>, vector<8x2048xf32> -> vector<8x2048xf32>
    %33 = arith.addf %27, %32 : vector<8x2048xf32>
    %c2047_i32 = arith.constant 2047 : i32
    %34 = tpu.dynamic_rotate %33 by %c2047_i32 dim 1 : vector<8x2048xf32>, i32 -> vector<8x2048xf32>
    %35 = arith.addf %16, %34 : vector<8x2048xf32>
    %c0_48 = arith.constant 0 : index
    %c0_49 = arith.constant 0 : index
    %c0_50 = arith.constant 0 : index
    %c0_51 = arith.constant 0 : index
    %36 = vector.load %arg3[%c0_48, %c0_49, %c0_50, %c0_51] : memref<1x1x4x2304xbf16, #tpu.memory_space<vmem>>, vector<1x1x4x2048xbf16>
    %37 = vector.shape_cast %36 : vector<1x1x4x2048xbf16> to vector<4x2048xbf16>
    %c0_52 = arith.constant 0 : index
    %c2_53 = arith.constant 2 : index
    %c0_54 = arith.constant 0 : index
    %c0_55 = arith.constant 0 : index
    %38 = vector.load %arg4[%c0_52, %c2_53, %c0_54, %c0_55] : memref<3x3x8x4xbf16, #tpu.memory_space<vmem>>, vector<1x1x8x4xbf16>
    %39 = vector.shape_cast %38 : vector<1x1x8x4xbf16> to vector<8x4xbf16>
    %cst_56 = arith.constant dense<0.000000e+00> : vector<8x2048xf32>
    %40 = tpu.matmul %39, %37, %cst_56 {dimension_numbers = #tpu.dot_dimension_numbers<[1], [0], [0], [1], [0, 0, 1, 1], [], []>} : vector<8x4xbf16>, vector<4x2048xbf16>, vector<8x2048xf32> -> vector<8x2048xf32>
    %c0_57 = arith.constant 0 : index
    %c0_58 = arith.constant 0 : index
    %c0_59 = arith.constant 0 : index
    %c128_60 = arith.constant 128 : index
    %41 = vector.load %arg3[%c0_57, %c0_58, %c0_59, %c128_60] : memref<1x1x4x2304xbf16, #tpu.memory_space<vmem>>, vector<1x1x4x2048xbf16>
    %42 = vector.shape_cast %41 : vector<1x1x4x2048xbf16> to vector<4x2048xbf16>
    %c1_61 = arith.constant 1 : index
    %c2_62 = arith.constant 2 : index
    %c0_63 = arith.constant 0 : index
    %c0_64 = arith.constant 0 : index
    %43 = vector.load %arg4[%c1_61, %c2_62, %c0_63, %c0_64] : memref<3x3x8x4xbf16, #tpu.memory_space<vmem>>, vector<1x1x8x4xbf16>
    %44 = vector.shape_cast %43 : vector<1x1x8x4xbf16> to vector<8x4xbf16>
    %cst_65 = arith.constant dense<0.000000e+00> : vector<8x2048xf32>
    %45 = tpu.matmul %44, %42, %cst_65 {dimension_numbers = #tpu.dot_dimension_numbers<[1], [0], [0], [1], [0, 0, 1, 1], [], []>} : vector<8x4xbf16>, vector<4x2048xbf16>, vector<8x2048xf32> -> vector<8x2048xf32>
    %46 = arith.addf %40, %45 : vector<8x2048xf32>
    %c0_66 = arith.constant 0 : index
    %c0_67 = arith.constant 0 : index
    %c0_68 = arith.constant 0 : index
    %c256_69 = arith.constant 256 : index
    %47 = vector.load %arg3[%c0_66, %c0_67, %c0_68, %c256_69] : memref<1x1x4x2304xbf16, #tpu.memory_space<vmem>>, vector<1x1x4x2048xbf16>
    %48 = vector.shape_cast %47 : vector<1x1x4x2048xbf16> to vector<4x2048xbf16>
    %c2_70 = arith.constant 2 : index
    %c2_71 = arith.constant 2 : index
    %c0_72 = arith.constant 0 : index
    %c0_73 = arith.constant 0 : index
    %49 = vector.load %arg4[%c2_70, %c2_71, %c0_72, %c0_73] : memref<3x3x8x4xbf16, #tpu.memory_space<vmem>>, vector<1x1x8x4xbf16>
    %50 = vector.shape_cast %49 : vector<1x1x8x4xbf16> to vector<8x4xbf16>
    %cst_74 = arith.constant dense<0.000000e+00> : vector<8x2048xf32>
    %51 = tpu.matmul %50, %48, %cst_74 {dimension_numbers = #tpu.dot_dimension_numbers<[1], [0], [0], [1], [0, 0, 1, 1], [], []>} : vector<8x4xbf16>, vector<4x2048xbf16>, vector<8x2048xf32> -> vector<8x2048xf32>
    %52 = arith.addf %46, %51 : vector<8x2048xf32>
    %c2046_i32 = arith.constant 2046 : i32
    %53 = tpu.dynamic_rotate %52 by %c2046_i32 dim 1 : vector<8x2048xf32>, i32 -> vector<8x2048xf32>
    %54 = arith.addf %35, %53 : vector<8x2048xf32>
    %c0_i32 = arith.constant 0 : i32
    %55 = arith.cmpi eq, %arg2, %c0_i32 : i32
    %56 = arith.extui %55 : i1 to i32
    %c0_i32_75 = arith.constant 0 : i32
    %57 = arith.cmpi ne, %56, %c0_i32_75 : i32
    scf.if %57 {
      %cst_94 = arith.constant 0.000000e+00 : f32
      %79 = vector.broadcast %cst_94 : f32 to vector<8x1xf32>
      %c0_95 = arith.constant 0 : index
      %c0_96 = arith.constant 0 : index
      %80 = vector.load %arg9[%c0_95, %c0_96] : memref<8x1xf32, #tpu.memory_space<vmem>>, vector<8x1xf32>
      tpu.vector_store %arg9[%c0_95, %c0_96], %79 {strides = array<i32>} : memref<8x1xf32, #tpu.memory_space<vmem>>, vector<8x1xf32>,
      %cst_97 = arith.constant 0.000000e+00 : f32
      %81 = vector.broadcast %cst_97 : f32 to vector<8x1xf32>
      %c0_98 = arith.constant 0 : index
      %c0_99 = arith.constant 0 : index
      %82 = vector.load %arg10[%c0_98, %c0_99] : memref<8x1xf32, #tpu.memory_space<vmem>>, vector<8x1xf32>
      tpu.vector_store %arg10[%c0_98, %c0_99], %81 {strides = array<i32>} : memref<8x1xf32, #tpu.memory_space<vmem>>, vector<8x1xf32>,
    } else {
    }
    %c0_76 = arith.constant 0 : index
    %c0_77 = arith.constant 0 : index
    %c0_78 = arith.constant 0 : index
    %58 = vector.load %arg5[%c0_76, %c0_77, %c0_78] : memref<1x1x2048xf32, #tpu.memory_space<vmem>>, vector<1x1x2048xf32>
    %59 = vector.shape_cast %58 : vector<1x1x2048xf32> to vector<1x2048xf32>
    %60 = vector.broadcast %59 : vector<1x2048xf32> to vector<8x2048xf32>
    %61 = arith.mulf %54, %60 : vector<8x2048xf32>
    %c0_79 = arith.constant 0 : index
    %c0_80 = arith.constant 0 : index
    %62 = vector.load %arg9[%c0_79, %c0_80] : memref<8x1xf32, #tpu.memory_space<vmem>>, vector<8x1xf32>
    %cst_81 = arith.constant dense<0.000000e+00> : vector<8xf32>
    %63 = vector.multi_reduction <add>, %61, %cst_81 [1] : vector<8x2048xf32> to vector<8xf32>
    %64 = vector.shape_cast %63 : vector<8xf32> to vector<8x1xf32>
    %65 = arith.addf %62, %64 : vector<8x1xf32>
    %c0_82 = arith.constant 0 : index
    %c0_83 = arith.constant 0 : index
    %66 = vector.load %arg9[%c0_82, %c0_83] : memref<8x1xf32, #tpu.memory_space<vmem>>, vector<8x1xf32>
    tpu.vector_store %arg9[%c0_82, %c0_83], %65 {strides = array<i32>} : memref<8x1xf32, #tpu.memory_space<vmem>>, vector<8x1xf32>,
    %c0_84 = arith.constant 0 : index
    %c0_85 = arith.constant 0 : index
    %67 = vector.load %arg10[%c0_84, %c0_85] : memref<8x1xf32, #tpu.memory_space<vmem>>, vector<8x1xf32>
    %68 = arith.mulf %61, %54 : vector<8x2048xf32>
    %cst_86 = arith.constant dense<0.000000e+00> : vector<8xf32>
    %69 = vector.multi_reduction <add>, %68, %cst_86 [1] : vector<8x2048xf32> to vector<8xf32>
    %70 = vector.shape_cast %69 : vector<8xf32> to vector<8x1xf32>
    %71 = arith.addf %67, %70 : vector<8x1xf32>
    %c0_87 = arith.constant 0 : index
    %c0_88 = arith.constant 0 : index
    %72 = vector.load %arg10[%c0_87, %c0_88] : memref<8x1xf32, #tpu.memory_space<vmem>>, vector<8x1xf32>
    tpu.vector_store %arg10[%c0_87, %c0_88], %71 {strides = array<i32>} : memref<8x1xf32, #tpu.memory_space<vmem>>, vector<8x1xf32>,
    %c0_89 = arith.constant 0 : index
    %c0_90 = arith.constant 0 : index
    %c0_91 = arith.constant 0 : index
    %73 = vector.load %arg6[%c0_89, %c0_90, %c0_91] : memref<1x8x2048xf32, #tpu.memory_space<vmem>>, vector<1x8x2048xf32>
    %74 = vector.shape_cast %73 : vector<1x8x2048xf32> to vector<8x2048xf32>
    %75 = vector.shape_cast %54 : vector<8x2048xf32> to vector<1x8x2048xf32>
    tpu.vector_store %arg6[%c0_89, %c0_90, %c0_91], %75 {strides = array<i32>} : memref<1x8x2048xf32, #tpu.memory_space<vmem>>, vector<1x8x2048xf32>,
    %c0_i32_92 = arith.constant 0 : i32
    %76 = arith.cmpi eq, %arg2, %c0_i32_92 : i32
    %77 = arith.extui %76 : i1 to i32
    %c0_i32_93 = arith.constant 0 : i32
    %78 = arith.cmpi ne, %77, %c0_i32_93 : i32
    scf.if %78 {
      %c0_94 = arith.constant 0 : index
      %c0_95 = arith.constant 0 : index
      %79 = vector.load %arg9[%c0_94, %c0_95] : memref<8x1xf32, #tpu.memory_space<vmem>>, vector<8x1xf32>
      %cst_96 = arith.constant 3.906250e-03 : f32
      %80 = vector.broadcast %cst_96 : f32 to vector<8x1xf32>
      %81 = arith.mulf %79, %80 : vector<8x1xf32>
      %c0_97 = arith.constant 0 : index
      %c0_98 = arith.constant 0 : index
      %82 = vector.load %arg10[%c0_97, %c0_98] : memref<8x1xf32, #tpu.memory_space<vmem>>, vector<8x1xf32>
      %cst_99 = arith.constant 3.906250e-03 : f32
      %83 = vector.broadcast %cst_99 : f32 to vector<8x1xf32>
      %84 = arith.mulf %82, %83 : vector<8x1xf32>
      %85 = arith.mulf %81, %81 : vector<8x1xf32>
      %86 = arith.subf %84, %85 : vector<8x1xf32>
      %cst_100 = arith.constant 0.000000e+00 : f32
      %87 = vector.broadcast %cst_100 : f32 to vector<8x1xf32>
      %88 = arith.maximumf %86, %87 : vector<8x1xf32>
      %c0_101 = arith.constant 0 : index
      %c0_102 = arith.constant 0 : index
      %c0_103 = arith.constant 0 : index
      %89 = vector.load %arg7[%c0_101, %c0_102, %c0_103] : memref<1x8x1xf32, #tpu.memory_space<vmem>>, vector<1x8x1xf32>
      %90 = vector.shape_cast %89 : vector<1x8x1xf32> to vector<8x1xf32>
      %91 = vector.shape_cast %81 : vector<8x1xf32> to vector<1x8x1xf32>
      tpu.vector_store %arg7[%c0_101, %c0_102, %c0_103], %91 {strides = array<i32>} : memref<1x8x1xf32, #tpu.memory_space<vmem>>, vector<1x8x1xf32>,
      %cst_104 = arith.constant 9.99999974E-6 : f32
      %92 = vector.broadcast %cst_104 : f32 to vector<8x1xf32>
      %93 = arith.addf %88, %92 : vector<8x1xf32>
      %94 = math.rsqrt %93 : vector<8x1xf32>
      %c0_105 = arith.constant 0 : index
      %c0_106 = arith.constant 0 : index
      %c0_107 = arith.constant 0 : index
      %95 = vector.load %arg8[%c0_105, %c0_106, %c0_107] : memref<1x8x1xf32, #tpu.memory_space<vmem>>, vector<1x8x1xf32>
      %96 = vector.shape_cast %95 : vector<1x8x1xf32> to vector<8x1xf32>
      %97 = vector.shape_cast %94 : vector<8x1xf32> to vector<1x8x1xf32>
      tpu.vector_store %arg8[%c0_105, %c0_106, %c0_107], %97 {strides = array<i32>} : memref<1x8x1xf32, #tpu.memory_space<vmem>>, vector<1x8x1xf32>,
    } else {
    }
    return
  }
  func.func @transform_0(%arg0: i32, %arg1: i32, %arg2: i32) -> (i32, i32, i32, i32) {
    %c0_i32 = arith.constant 0 : i32
    %c0_i32_0 = arith.constant 0 : i32
    %c0_i32_1 = arith.constant 0 : i32
    return %arg0, %arg2, %c0_i32, %c0_i32_0 : i32, i32, i32, i32
  }
  func.func @transform_1(%arg0: i32, %arg1: i32, %arg2: i32) -> (i32, i32, i32, i32) {
    %c0_i32 = arith.constant 0 : i32
    %c0_i32_0 = arith.constant 0 : i32
    %c0_i32_1 = arith.constant 0 : i32
    %c0_i32_2 = arith.constant 0 : i32
    return %c0_i32, %c0_i32_0, %arg1, %c0_i32_1 : i32, i32, i32, i32
  }
  func.func @transform_2(%arg0: i32, %arg1: i32, %arg2: i32) -> (i32, i32, i32) {
    %c0_i32 = arith.constant 0 : i32
    %c0_i32_0 = arith.constant 0 : i32
    %c0_i32_1 = arith.constant 0 : i32
    return %arg2, %c0_i32, %c0_i32_0 : i32, i32, i32
  }
  func.func @transform_3(%arg0: i32, %arg1: i32, %arg2: i32) -> (i32, i32, i32) {
    %c0_i32 = arith.constant 0 : i32
    return %arg0, %arg1, %arg2 : i32, i32, i32
  }
  func.func @transform_4(%arg0: i32, %arg1: i32, %arg2: i32) -> (i32, i32, i32) {
    %c0_i32 = arith.constant 0 : i32
    %c0_i32_0 = arith.constant 0 : i32
    return %arg0, %arg1, %c0_i32 : i32, i32, i32
  }
  func.func @transform_5(%arg0: i32, %arg1: i32, %arg2: i32) -> (i32, i32, i32) {
    %c0_i32 = arith.constant 0 : i32
    %c0_i32_0 = arith.constant 0 : i32
    return %arg0, %arg1, %c0_i32 : i32, i32, i32
  }
}

</mosaic_0001>

<bundles_post_ra>
// kernel: tpu_custom_call.1
= control target key start
LH: loop header
LB: loop body
LE: loop exit
PB: predicated region body
PF: predicated region fallthrough
CT: control target
= control target key end

     0   :  { %s4907_s0 = inlined_call_operand.hbm [shape: bf16[2,1,4,2304], index: 0, kind: input, shape index: {}]   ;;  %s4908_s1 = inlined_call_operand.vmem [shape: bf16[3,3,8,4], index: 1, kind: input, shape index: {}]   ;;  %s4909_s2 = inlined_call_operand.vmem [shape: f32[1,1,2048], index: 2, kind: input, shape index: {}]   ;;  %s4910_s3 = inlined_call_operand.hbm [shape: f32[2,8,2048], index: 3, kind: output, shape index: {0}]   ;;  %s4911_s4 = inlined_call_operand.vmem [shape: f32[2,8,1], index: 4, kind: output, shape index: {1}]   ;;  %s4912_s5 = inlined_call_operand.vmem [shape: f32[2,8,1], index: 5, kind: output, shape index: {2}]  }
   0x1   :  { %4914 = sst [smem:[#allocation18_spill]] %s4907_s0 }
   0x2   :  { %11 = vsyncpa [#allocation5], 0 }
   0x3   :  { %13 = vsyncpa [#allocation5 + $0x1], 0 }
   0x4   :  { %14 = vsyncpa [#allocation6], 0 }
   0x5   :  { %16 = vsyncpa [#allocation6 + $0x1], 0  ;;  %s3705_s18 = smov 0   ;;  %s3707_s19 = smov 0  }
   0x6   :  { %s3709_s20 = smov 0   ;;  %s3711_s21 = smov 0  }
   0x7   :  { %s3713_s22 = smov 0   ;;  %s3715_s23 = smov 0  }
   0x8 LB: > { %s3319_s24 = sadd.s32 4294967295, %s3670_s23   ;;  %s3320_s25 = sadd.s32 4294967294, %s3670_s23   ;;  %s3670_s23 = sphi %s3715_s23, %s22_s23   ;;  %s3666_s22 = sphi %s3713_s22, %s4940_s22   ;;  %s3662_s21 = sphi %s3711_s21, %s4939_s21   ;;  %s3658_s20 = sphi %s3709_s20, %s4938_s20   ;;  %s3654_s19 = sphi %s3707_s19, %s4937_s19   ;;  %s3650_s18 = sphi %s3705_s18, %s4936_s18  }
   0x9   : > { %s41_s26 = sadd.s32 1, %s3666_s22  ;;  %s50_s27 = sadd.s32 1, %s3658_s20 }
   0xa   : > { %p43_p0 = scmp.ge.s32.totalorder %s41_s26, 2  ;;  %p57_p1 = scmp.ne.s32.totalorder %s3658_s20, %s3654_s19 }
   0xb   : > { %p58_p2 = scmp.eq.s32.totalorder %s3670_s23, 0  ;;  %p63_p3 = scmp.ne.s32.totalorder %s3654_s19, %s3650_s18 }
   0xc   : > { %s4942_s26 = smov (%p43_p0, %s41_s26), 0  ;;  %p64_p5 = scmp.eq.s32.totalorder %s3319_s24, 0 }
   0xd   : > { %p3746_p4 = por %p58_p2, %p57_p1  ;;  %s45_s29 = ssub.s32 %s3666_s22, %s4942_s26 }
   0xe   : > { %p143_p6 = scmp.eq.s32.totalorder %s3319_s24, 1  ;;  %p48_p7 = scmp.eq.s32.totalorder %s45_s29, 0 }
   0xf   : > { %p3752_p8 = por %p64_p5, %p63_p3  ;;  %p149_p10 = scmp.eq.s32.totalorder %s3320_s25, 1 }
  0x10   : > { %p3756_p9 = por %p143_p6, %p57_p1  ;;  %p3324_p12 = scmp.ge.s32.totalorder %s3670_s23, 2 }
  0x11   : > { %s3761_s7 = scalar_select %p48_p7, %s3658_s20, %s50_s27  }
  0x12   : > { %p3763_p11 = por %p149_p10, %p63_p3  ;;  %p3503_p13 = scmp.lt.s32.totalorder %s3670_s23, 2 }
  0x13   : > { %s239_s9 = sand.u32 1, %s3658_s20   ;;  %s3489_s11 = smul.u32 36, %s3666_s22 }
  0x14   : > { %s3488_s10 = smul.u32 36, %s239_s9  ;;  %p3496_p0 = pnand %p3503_p13, %p3746_p4 }
  0x15   : > { %p3326_p2 = scmp.ge.s32.totalorder %s3670_s23, 1  ;;  %s4919_s0 = sld [smem:[#allocation18_spill]] }
  0x16   : > { %s243_s15 = scalar_lea.vmem [#allocation4], %s3488_s10  ;;  %s240_s24 = scalar_lea.sflag [#allocation5], %s239_s9 }
  0x17   : > { %s254_s16 = sshll.u32 %s243_s15, 4  ;;  %p259_p1 = scmp.lt.s32.totalorder %s3670_s23, 3  ;;  %s255_s16 = int_to_ptr.vmem [resolvable:$true] %s254_s16 }
  0x19   : > { %p260_p3 = pnand %p3326_p2, %p259_p1 }
  0x1b   : > { %s250_s14 = scalar_lea.hbm %s4919_s0, %s3489_s11  ;;  %263 = sbr.rel (%p260_p3) target bundleno = 1026 (0x402), region = 32 }
  0x1c   : > { %s252_s17 = sshll.u32 %s250_s14, 4  ;;  %s253_s17 = int_to_ptr.hbm [resolvable:$true] %s252_s17 }
  0x1d   : > { %3498 = dma.hbm_to_vmem [thread:$0]  (!%p3496_p0), %s253_s17, 576, %s255_s16, %s240_s24  }
  0x20   : > { %s3779_s25 = sand.u32 1, %s3654_s19  }
  0x21   : > { %s3490_s27 = smul.u32 36, %s3779_s25  ;;  %s266_s28 = scalar_lea.sflag [#allocation5], %s3779_s25 }
  0x23   : > { %s3783_s29 = scalar_lea.vmem [#allocation4], %s3490_s27 }
  0x24   : > { %3641 = dma.done.wait (%p3752_p8), %s266_s28, 576  }
  0x25   : > { %3643 = vsyncadd (%p3752_p8), %s266_s28, 4294966720  ;;  %v3790_v0 = vld [vmem:[%s3783_s29 + $0x2] sm:$0xff]  ;;  %v3793_v1 = vld [vmem:[%s3783_s29 + $0xa] sm:$0xff]  ;;  %vm383_vm0 = vcmask 1041408   ;;  %vm379_vm1 = vcmask 31744   ;;  %s3672_s10 = smov 127  }
  0x26   : > { %355 = vst [vmem:[#allocation1] ss:$4 sm:$0xff] %v3790_v0  ;;  %v3798_v2 = vld [vmem:[%s3783_s29 + $0x12] sm:$0xff]  ;;  %v3823_v20 = vld [vmem:[%s3783_s29 + $0x1a] sm:$0xff]  ;;  %v3859_v46 = vld [vmem:[%s3783_s29 + $0x8] sm:$0xff]  ;;  %s3673_s13 = smov 126  }
  0x27   : > { %358 = vst [vmem:[#allocation1 + $0x20] ss:$4 sm:$0xff] %v3793_v1  ;;  %v3806_v10 = vld [vmem:[%s4908_s1 + $0xc] sm:$0xf]  ;;  %v3843_v37 = vld [vmem:[%s3783_s29] sm:$0xff]  ;;  %s3327_s14 = sshll.u32 %s3779_s25, 7 }
  0x28   : > { %v3875_v55 = vld [vmem:[%s3783_s29 + $0x10] sm:$0xff]  ;;  %v3881_v57 = vld [vmem:[%s4908_s1] sm:$0xf]  ;;  %s4716_s15 = scalar_lea.vmem [#allocation7], %s3327_s14  ;;  %vm2946_vm4 = vcmask 7168   ;;  %s3487_s28 = sshll.u32 %s3662_s21, 7 }
  0x29   : > { %s3127_s9 = scalar_lea.hbm %s4910_s3, %s3487_s28  ;;  %s3098_s12 = scalar_lea.sflag [#allocation6], %s3779_s25 }
  0x2a   : > { %s3131_s11 = sshll.u32 %s3127_s9, 4  ;;  %s3608_s24 = scalar_lea.hbm %s4910_s3, 256  ;;  %s3132_s11 = int_to_ptr.hbm [resolvable:$true] %s3131_s11 }
  0x2d   : > { %v359_v3 = vld.sshfl [vmem:[#allocation1] sm:$0xff pattern:$0x73625140]  ;;  %v360_v4 = vld.sshfl [vmem:[#allocation1 + $0x8] sm:$0xff pattern:$0x73625140] }
  0x2e   : > { %v384_v5 = vsel %vm383_vm0, %v359_v3, 0  ;;  %v386_v6 = vsel %vm383_vm0, %v360_v4, 0  ;;  %v361_v7 = vld.sshfl [vmem:[#allocation1 + $0x10] sm:$0xff pattern:$0x73625140] }
  0x2f   : > { %423 = vmatpush.bf16.msra.mxu0 %v384_v5  ;;  %436 = vmatpush.bf16.msra.mxu1 %v386_v6  ;;  %v388_v8 = vsel %vm383_vm0, %v361_v7, 0  ;;  %v362_v9 = vld.sshfl [vmem:[#allocation1 + $0x18] sm:$0xff pattern:$0x73625140] }
  0x30   : > { %449 = vmatpush.bf16.msra.mxu2 %v388_v8  ;;  %v390_v11 = vsel %vm383_vm0, %v362_v9, 0  ;;  %v364_v12 = vld.sshfl [vmem:[#allocation1 + $0x28] sm:$0xff pattern:$0x73625140]  ;;  %368 = vst [vmem:[#allocation1] ss:$4 sm:$0xff] %v3798_v2 }
  0x31   : > { %462 = vmatpush.bf16.msra.mxu3 %v390_v11  ;;  %v394_v13 = vsel %vm383_vm0, %v364_v12, 0  ;;  %v365_v14 = vld.sshfl [vmem:[#allocation1 + $0x30] sm:$0xff pattern:$0x73625140] }
  0x32   : > { %3331 = vmatmul.msk.bf16.vlgmr.msra.gmra.mxu0 %vm379_vm1, %v3806_v10  ;;  %3332 = vmatmul.msk.bf16.vlgmr.msra.gmra.mxu1 %vm379_vm1, %v3806_v10  ;;  %v396_v15 = vsel %vm383_vm0, %v365_v14, 0  ;;  %v366_v16 = vld.sshfl [vmem:[#allocation1 + $0x38] sm:$0xff pattern:$0x73625140] }
  0x33   : > { %3333 = vmatmul.msk.bf16.vlgmr.msra.gmra.mxu2 %vm379_vm1, %v3806_v10  ;;  %488 = vmatpush.bf16.msrb.mxu1 %v394_v13  ;;  %v398_v17 = vsel %vm383_vm0, %v366_v16, 0  ;;  %v363_v18 = vld.sshfl [vmem:[#allocation1 + $0x20] sm:$0xff pattern:$0x73625140]  ;;  %v3896_v4 = vld [vmem:[%s3783_s29 + $0x18] sm:$0xff] }
  0x34   : > { %3334 = vmatmul.msk.bf16.vlgmr.msra.gmra.mxu3 %vm379_vm1, %v3806_v10  ;;  %501 = vmatpush.bf16.msrb.mxu2 %v396_v15  ;;  %v392_v19 = vsel %vm383_vm0, %v363_v18, 0  ;;  %370 = vst [vmem:[#allocation1 + $0x20] ss:$4 sm:$0xff] %v3823_v20  ;;  %v3912_v13 = vld [vmem:[%s3783_s29 + $0x4] sm:$0xff] }
  0x35   : > { %514 = vmatpush.bf16.msrb.mxu3 %v398_v17  ;;  %475 = vmatpush.bf16.msrb.mxu0 %v392_v19 }
  0x37   : > { %v372_v21 = vld.sshfl [vmem:[#allocation1 + $0x8] sm:$0xff pattern:$0x73625140]  ;;  %v373_v22 = vld.sshfl [vmem:[#allocation1 + $0x10] sm:$0xff pattern:$0x73625140] }
  0x38   : > { %v402_v23 = vsel %vm383_vm0, %v372_v21, 0  ;;  %v404_v24 = vsel %vm383_vm0, %v373_v22, 0  ;;  %v374_v25 = vld.sshfl [vmem:[#allocation1 + $0x18] sm:$0xff pattern:$0x73625140] }
  0x39   : > { %540 = vmatpush.bf16.msra.mxu1 %v402_v23  ;;  %553 = vmatpush.bf16.msra.mxu2 %v404_v24  ;;  %v406_v26 = vsel %vm383_vm0, %v374_v25, 0  ;;  %v371_v27 = vld.sshfl [vmem:[#allocation1] sm:$0xff pattern:$0x73625140] }
  0x3a   : > { %566 = vmatpush.bf16.msra.mxu3 %v406_v26  ;;  %v400_v28 = vsel %vm383_vm0, %v371_v27, 0  ;;  %625 = vst [vmem:[#allocation1] ss:$4 sm:$0xff] %v3843_v37  ;;  %v3928_v23 = vld [vmem:[%s3783_s29 + $0xc] sm:$0xff] }
  0x3b   : > { %527 = vmatpush.bf16.msra.mxu0 %v400_v28  ;;  %v376_v29 = vld.sshfl [vmem:[#allocation1 + $0x28] sm:$0xff pattern:$0x73625140]  ;;  %v377_v30 = vld.sshfl [vmem:[#allocation1 + $0x30] sm:$0xff pattern:$0x73625140] }
  0x3c   : > { %v378_v31 = vld.sshfl [vmem:[#allocation1 + $0x38] sm:$0xff pattern:$0x73625140]  ;;  %v375_v32 = vld.sshfl [vmem:[#allocation1 + $0x20] sm:$0xff pattern:$0x73625140] }
  0x3d   : > { %v410_v33 = vsel %vm383_vm0, %v376_v29, 0  ;;  %v412_v34 = vsel %vm383_vm0, %v377_v30, 0  ;;  %v414_v35 = vsel %vm383_vm0, %v378_v31, 0  ;;  %v408_v36 = vsel %vm383_vm0, %v375_v32, 0  ;;  %628 = vst [vmem:[#allocation1 + $0x20] ss:$4 sm:$0xff] %v3859_v46 }
  0x3e   : > { %v3944_v32 = vld [vmem:[%s3783_s29 + $0x14] sm:$0xff] }
  0x41   : > { %v630_v38 = vld.sshfl [vmem:[#allocation1 + $0x8] sm:$0xff pattern:$0x73625140]  ;;  %v631_v39 = vld.sshfl [vmem:[#allocation1 + $0x10] sm:$0xff pattern:$0x73625140] }
  0x42   : > { %3335 = vmatmul.msk.bf16.vlgmr.msrb.gmra.mxu0 %vm379_vm1, %v3806_v10  ;;  %3336 = vmatmul.msk.bf16.vlgmr.msrb.gmra.mxu1 %vm379_vm1, %v3806_v10  ;;  %v632_v40 = vld.sshfl [vmem:[#allocation1 + $0x18] sm:$0xff pattern:$0x73625140]  ;;  %v629_v41 = vld.sshfl [vmem:[#allocation1] sm:$0xff pattern:$0x73625140] }
  0x43   : > { %3337 = vmatmul.msk.bf16.vlgmr.msrb.gmra.mxu2 %vm379_vm1, %v3806_v10  ;;  %592 = vmatpush.bf16.msrb.mxu1 %v410_v33  ;;  %v654_v42 = vsel %vm383_vm0, %v630_v38, 0  ;;  %v656_v43 = vsel %vm383_vm0, %v631_v39, 0  ;;  %v658_v44 = vsel %vm383_vm0, %v632_v40, 0  ;;  %v652_v45 = vsel %vm383_vm0, %v629_v41, 0  ;;  %638 = vst [vmem:[#allocation1] ss:$4 sm:$0xff] %v3875_v55 }
  0x44   : > { %3338 = vmatmul.msk.bf16.vlgmr.msrb.gmra.mxu3 %vm379_vm1, %v3806_v10  ;;  %605 = vmatpush.bf16.msrb.mxu2 %v412_v34  ;;  %v634_v47 = vld.sshfl [vmem:[#allocation1 + $0x28] sm:$0xff pattern:$0x73625140]  ;;  %v635_v48 = vld.sshfl [vmem:[#allocation1 + $0x30] sm:$0xff pattern:$0x73625140] }
  0x45   : > { %618 = vmatpush.bf16.msrb.mxu3 %v414_v35  ;;  %579 = vmatpush.bf16.msrb.mxu0 %v408_v36  ;;  %v636_v49 = vld.sshfl [vmem:[#allocation1 + $0x38] sm:$0xff pattern:$0x73625140]  ;;  %v633_v50 = vld.sshfl [vmem:[#allocation1 + $0x20] sm:$0xff pattern:$0x73625140] }
  0x46   : > { %v662_v51 = vsel %vm383_vm0, %v634_v47, 0  ;;  %v664_v52 = vsel %vm383_vm0, %v635_v48, 0  ;;  %v666_v53 = vsel %vm383_vm0, %v636_v49, 0  ;;  %v660_v54 = vsel %vm383_vm0, %v633_v50, 0  ;;  %640 = vst [vmem:[#allocation1 + $0x20] ss:$4 sm:$0xff] %v3896_v4 }
  0x47   : > { %v3954_v40 = vld [vmem:[%s4908_s1 + $0x18] sm:$0xf] }
  0x4a   : > { %v642_v56 = vld.sshfl [vmem:[#allocation1 + $0x8] sm:$0xff pattern:$0x73625140]  ;;  %v643_v58 = vld.sshfl [vmem:[#allocation1 + $0x10] sm:$0xff pattern:$0x73625140] }
  0x4b   : > { %v644_v59 = vld.sshfl [vmem:[#allocation1 + $0x18] sm:$0xff pattern:$0x73625140]  ;;  %v641_v60 = vld.sshfl [vmem:[#allocation1] sm:$0xff pattern:$0x73625140] }
  0x4c   : > { %v670_v61 = vsel %vm383_vm0, %v642_v56, 0  ;;  %v672_v62 = vsel %vm383_vm0, %v643_v58, 0  ;;  %v674_v63 = vsel %vm383_vm0, %v644_v59, 0  ;;  %v668_v3 = vsel %vm383_vm0, %v641_v60, 0  ;;  %899 = vst [vmem:[#allocation1] ss:$4 sm:$0xff] %v3912_v13 }
  0x4d   : > { %v646_v5 = vld.sshfl [vmem:[#allocation1 + $0x28] sm:$0xff pattern:$0x73625140]  ;;  %v647_v6 = vld.sshfl [vmem:[#allocation1 + $0x30] sm:$0xff pattern:$0x73625140] }
  0x4e   : > { %v648_v7 = vld.sshfl [vmem:[#allocation1 + $0x38] sm:$0xff pattern:$0x73625140]  ;;  %v645_v8 = vld.sshfl [vmem:[#allocation1 + $0x20] sm:$0xff pattern:$0x73625140] }
  0x4f   : > { %v678_v9 = vsel %vm383_vm0, %v646_v5, 0  ;;  %v682_v11 = vsel %vm383_vm0, %v648_v7, 0  ;;  %v676_v12 = vsel %vm383_vm0, %v645_v8, 0  ;;  %902 = vst [vmem:[#allocation1 + $0x20] ss:$4 sm:$0xff] %v3928_v23 }
  0x52   : > { %3339 = vmatmul.msk.bf16.vlgmr.msra.gmra.mxu0 %vm379_vm1, %v3806_v10  ;;  %3340 = vmatmul.msk.bf16.vlgmr.msra.gmra.mxu1 %vm379_vm1, %v3806_v10 }
  0x53   : > { %3341 = vmatmul.msk.bf16.vlgmr.msra.gmra.mxu2 %vm379_vm1, %v3806_v10  ;;  %704 = vmatpush.bf16.msra.mxu1 %v654_v42  ;;  %v904_v14 = vld.sshfl [vmem:[#allocation1 + $0x8] sm:$0xff pattern:$0x73625140]  ;;  %v905_v15 = vld.sshfl [vmem:[#allocation1 + $0x10] sm:$0xff pattern:$0x73625140] }
  0x54   : > { %3342 = vmatmul.msk.bf16.vlgmr.msra.gmra.mxu3 %vm379_vm1, %v3806_v10  ;;  %717 = vmatpush.bf16.msra.mxu2 %v656_v43  ;;  %v906_v16 = vld.sshfl [vmem:[#allocation1 + $0x18] sm:$0xff pattern:$0x73625140]  ;;  %v903_v17 = vld.sshfl [vmem:[#allocation1] sm:$0xff pattern:$0x73625140] }
  0x55   : > { %730 = vmatpush.bf16.msra.mxu3 %v658_v44  ;;  %691 = vmatpush.bf16.msra.mxu0 %v652_v45  ;;  %v928_v18 = vsel %vm383_vm0, %v904_v14, 0  ;;  %v930_v19 = vsel %vm383_vm0, %v905_v15, 0  ;;  %v932_v21 = vsel %vm383_vm0, %v906_v16, 0  ;;  %v926_v22 = vsel %vm383_vm0, %v903_v17, 0  ;;  %912 = vst [vmem:[#allocation1] ss:$4 sm:$0xff] %v3944_v32 }
  0x56   : > { %v908_v24 = vld.sshfl [vmem:[#allocation1 + $0x28] sm:$0xff pattern:$0x73625140]  ;;  %v909_v25 = vld.sshfl [vmem:[#allocation1 + $0x30] sm:$0xff pattern:$0x73625140] }
  0x57   : > { %v910_v26 = vld.sshfl [vmem:[#allocation1 + $0x38] sm:$0xff pattern:$0x73625140]  ;;  %v907_v27 = vld.sshfl [vmem:[#allocation1 + $0x20] sm:$0xff pattern:$0x73625140] }
  0x58   : > { %v936_v28 = vsel %vm383_vm0, %v908_v24, 0  ;;  %v938_v29 = vsel %vm383_vm0, %v909_v25, 0  ;;  %v940_v30 = vsel %vm383_vm0, %v910_v26, 0  ;;  %v934_v31 = vsel %vm383_vm0, %v907_v27, 0  ;;  %v3970_v45 = vld [vmem:[%s3783_s29 + $0x1c] sm:$0xff] }
  0x59   : > { %914 = vst [vmem:[#allocation1 + $0x20] ss:$4 sm:$0xff] %v3970_v45 }
  0x5c   : > { %v916_v33 = vld.sshfl [vmem:[#allocation1 + $0x8] sm:$0xff pattern:$0x73625140]  ;;  %v917_v34 = vld.sshfl [vmem:[#allocation1 + $0x10] sm:$0xff pattern:$0x73625140] }
  0x5d   : > { %v918_v35 = vld.sshfl [vmem:[#allocation1 + $0x18] sm:$0xff pattern:$0x73625140]  ;;  %v915_v36 = vld.sshfl [vmem:[#allocation1] sm:$0xff pattern:$0x73625140] }
  0x5e   : > { %1186 = vst [vmem:[#allocation1] ss:$4 sm:$0xff] %v3790_v0  ;;  %v944_v41 = vsel %vm383_vm0, %v916_v33, 0  ;;  %v946_v42 = vsel %vm383_vm0, %v917_v34, 0  ;;  %v948_v43 = vsel %vm383_vm0, %v918_v35, 0  ;;  %v942_v44 = vsel %vm383_vm0, %v915_v36, 0 }
  0x60   : > { %v919_v56 = vld.sshfl [vmem:[#allocation1 + $0x20] sm:$0xff pattern:$0x73625140] }
  0x62   : > { %3343 = vmatmul.msk.bf16.vlgmr.msrb.gmra.mxu0 %vm379_vm1, %v3806_v10  ;;  %3344 = vmatmul.msk.bf16.vlgmr.msrb.gmra.mxu1 %vm379_vm1, %v3806_v10 }
  0x63   : > { %3345 = vmatmul.msk.bf16.vlgmr.msrb.gmra.mxu2 %vm379_vm1, %v3806_v10  ;;  %756 = vmatpush.bf16.msrb.mxu1 %v662_v51  ;;  %v920_v51 = vld.sshfl [vmem:[#allocation1 + $0x28] sm:$0xff pattern:$0x73625140] }
  0x64   : > { %3346 = vmatmul.msk.bf16.vlgmr.msrb.gmra.mxu3 %vm379_vm1, %v3806_v10  ;;  %769 = vmatpush.bf16.msrb.mxu2 %v664_v52  ;;  %v680_v10 = vsel %vm383_vm0, %v647_v6, 0  ;;  %v921_v52 = vld.sshfl [vmem:[#allocation1 + $0x30] sm:$0xff pattern:$0x73625140]  ;;  %v952_v60 = vsel %vm383_vm0, %v920_v51, 0 }
  0x65   : > { %782 = vmatpush.bf16.msrb.mxu3 %v666_v53  ;;  %743 = vmatpush.bf16.msrb.mxu0 %v660_v54  ;;  %v922_v54 = vld.sshfl [vmem:[#allocation1 + $0x38] sm:$0xff pattern:$0x73625140]  ;;  %v1190_v7 = vld.sshfl [vmem:[#allocation1 + $0x8] sm:$0xff pattern:$0x73625140] }
  0x66   : > { %1188 = vst [vmem:[#allocation1 + $0x20] ss:$4 sm:$0xff] %v3793_v1  ;;  %v1191_v8 = vld.sshfl [vmem:[#allocation1 + $0x10] sm:$0xff pattern:$0x73625140]  ;;  %v1212_v17 = vsel %vm383_vm0, %v1190_v7, 0 }
  0x6d   : > { %v1194_v26 = vld.sshfl [vmem:[#allocation1 + $0x28] sm:$0xff pattern:$0x73625140]  ;;  %v1195_v27 = vld.sshfl [vmem:[#allocation1 + $0x30] sm:$0xff pattern:$0x73625140] }
  0x6e   : > { %v1220_v36 = vsel %vm383_vm0, %v1194_v26, 0 }
  0x72   : > { %3347 = vmatmul.msk.bf16.vlgmr.msra.gmra.mxu0 %vm379_vm1, %v3881_v57  ;;  %3348 = vmatmul.msk.bf16.vlgmr.msra.gmra.mxu1 %vm379_vm1, %v3881_v57 }
  0x73   : > { %3349 = vmatmul.msk.bf16.vlgmr.msra.gmra.mxu2 %vm379_vm1, %v3881_v57  ;;  %808 = vmatpush.bf16.msra.mxu1 %v670_v61  ;;  %v954_v61 = vsel %vm383_vm0, %v921_v52, 0 }
  0x74   : > { %3350 = vmatmul.msk.bf16.vlgmr.msra.gmra.mxu3 %vm379_vm1, %v3881_v57  ;;  %821 = vmatpush.bf16.msra.mxu2 %v672_v62  ;;  %v956_v62 = vsel %vm383_vm0, %v922_v54, 0 }
  0x75   : > { %834 = vmatpush.bf16.msra.mxu3 %v674_v63  ;;  %795 = vmatpush.bf16.msra.mxu0 %v668_v3  ;;  %v950_v63 = vsel %vm383_vm0, %v919_v56, 0 }
  0x82   : > { %3351 = vmatmul.msk.bf16.vlgmr.msrb.gmra.mxu0 %vm379_vm1, %v3881_v57  ;;  %3352 = vmatmul.msk.bf16.vlgmr.msrb.gmra.mxu1 %vm379_vm1, %v3881_v57 }
  0x83   : > { %3353 = vmatmul.msk.bf16.vlgmr.msrb.gmra.mxu2 %vm379_vm1, %v3881_v57  ;;  %860 = vmatpush.bf16.msrb.mxu1 %v678_v9 }
  0x84   : > { %3354 = vmatmul.msk.bf16.vlgmr.msrb.gmra.mxu3 %vm379_vm1, %v3881_v57  ;;  %873 = vmatpush.bf16.msrb.mxu2 %v680_v10  ;;  %v1192_v10 = vld.sshfl [vmem:[#allocation1 + $0x18] sm:$0xff pattern:$0x73625140] }
  0x85   : > { %886 = vmatpush.bf16.msrb.mxu3 %v682_v11  ;;  %847 = vmatpush.bf16.msrb.mxu0 %v676_v12  ;;  %v1189_v11 = vld.sshfl [vmem:[#allocation1] sm:$0xff pattern:$0x73625140] }
  0x86   : > { %1197 = vst [vmem:[#allocation1] ss:$4 sm:$0xff] %v3798_v2 }
  0x8d   : > { %v1200_v51 = vld.sshfl [vmem:[#allocation1 + $0x8] sm:$0xff pattern:$0x73625140]  ;;  %v1201_v52 = vld.sshfl [vmem:[#allocation1 + $0x10] sm:$0xff pattern:$0x73625140] }
  0x8e   : > { %v1202_v54 = vld.sshfl [vmem:[#allocation1 + $0x18] sm:$0xff pattern:$0x73625140]  ;;  %v1199_v56 = vld.sshfl [vmem:[#allocation1] sm:$0xff pattern:$0x73625140] }
  0x8f   : > { %1450 = vst [vmem:[#allocation1] ss:$4 sm:$0xff] %v3843_v37 }
  0x92   : > { %3355 = vmatmul.msk.bf16.vlgmr.msra.gmra.mxu0 %vm379_vm1, %v3881_v57  ;;  %3356 = vmatmul.msk.bf16.vlgmr.msra.gmra.mxu1 %vm379_vm1, %v3881_v57 }
  0x93   : > { %3357 = vmatmul.msk.bf16.vlgmr.msra.gmra.mxu2 %vm379_vm1, %v3881_v57  ;;  %978 = vmatpush.bf16.msra.mxu1 %v928_v18  ;;  %v1214_v18 = vsel %vm383_vm0, %v1191_v8, 0  ;;  %v1230_v8 = vsel %vm383_vm0, %v1201_v52, 0 }
  0x94   : > { %3358 = vmatmul.msk.bf16.vlgmr.msra.gmra.mxu3 %vm379_vm1, %v3881_v57  ;;  %991 = vmatpush.bf16.msra.mxu2 %v930_v19  ;;  %v1216_v19 = vsel %vm383_vm0, %v1192_v10, 0  ;;  %v1226_v10 = vsel %vm383_vm0, %v1199_v56, 0 }
  0x95   : > { %1004 = vmatpush.bf16.msra.mxu3 %v932_v21  ;;  %965 = vmatpush.bf16.msra.mxu0 %v926_v22  ;;  %v1210_v21 = vsel %vm383_vm0, %v1189_v11, 0 }
  0xa2   : > { %3359 = vmatmul.msk.bf16.vlgmr.msrb.gmra.mxu0 %vm379_vm1, %v3881_v57  ;;  %3360 = vmatmul.msk.bf16.vlgmr.msrb.gmra.mxu1 %vm379_vm1, %v3881_v57 }
  0xa3   : > { %3361 = vmatmul.msk.bf16.vlgmr.msrb.gmra.mxu2 %vm379_vm1, %v3881_v57  ;;  %1030 = vmatpush.bf16.msrb.mxu1 %v936_v28 }
  0xa4   : > { %3362 = vmatmul.msk.bf16.vlgmr.msrb.gmra.mxu3 %vm379_vm1, %v3881_v57  ;;  %1043 = vmatpush.bf16.msrb.mxu2 %v938_v29  ;;  %v1196_v29 = vld.sshfl [vmem:[#allocation1 + $0x38] sm:$0xff pattern:$0x73625140] }
  0xa5   : > { %1056 = vmatpush.bf16.msrb.mxu3 %v940_v30  ;;  %1017 = vmatpush.bf16.msrb.mxu0 %v934_v31  ;;  %v1193_v30 = vld.sshfl [vmem:[#allocation1 + $0x20] sm:$0xff pattern:$0x73625140] }
  0xa6   : > { %1198 = vst [vmem:[#allocation1 + $0x20] ss:$4 sm:$0xff] %v3823_v20 }
  0xaf   : > { %v3947_v38 = vpop.f32.mrf.mxu0  ;;  %v3949_v39 = vpop.f32.mrf.mxu1 }
  0xb2   : > { %3364 = vmatmul.msk.bf16.vlgmr.msra.gmra.mxu0 %vm379_vm1, %v3954_v40  ;;  %3365 = vmatmul.msk.bf16.vlgmr.msra.gmra.mxu1 %vm379_vm1, %v3954_v40 }
  0xb3   : > { %3366 = vmatmul.msk.bf16.vlgmr.msra.gmra.mxu2 %vm379_vm1, %v3954_v40  ;;  %1082 = vmatpush.bf16.msra.mxu1 %v944_v41  ;;  %v1222_v41 = vsel %vm383_vm0, %v1195_v27, 0 }
  0xb4   : > { %3367 = vmatmul.msk.bf16.vlgmr.msra.gmra.mxu3 %vm379_vm1, %v3954_v40  ;;  %1095 = vmatpush.bf16.msra.mxu2 %v946_v42  ;;  %v1224_v42 = vsel %vm383_vm0, %v1196_v29, 0 }
  0xb5   : > { %1108 = vmatpush.bf16.msra.mxu3 %v948_v43  ;;  %1069 = vmatpush.bf16.msra.mxu0 %v942_v44  ;;  %v1218_v43 = vsel %vm383_vm0, %v1193_v30, 0 }
  0xb6   : > { %v3973_v47 = vpop.f32.mrf.mxu2 }
  0xb7   : > { %v3975_v48 = vpop.f32.mrf.mxu3  ;;  %v427_v49 = vpop.f32.mrf.mxu0 }
  0xb8   : > { %v440_v50 = vpop.f32.mrf.mxu1 }
  0xbe   : > { %v453_v53 = vpop.f32.mrf.mxu2 }
  0xbf   : > { %v466_v57 = vpop.f32.mrf.mxu3  ;;  %v3977_v58 = vpop.f32.mrf.mxu0 }
  0xc0   : > { %v3980_v59 = vpop.f32.mrf.mxu1 }
  0xc2   : > { %3368 = vmatmul.msk.bf16.vlgmr.msrb.gmra.mxu0 %vm379_vm1, %v3954_v40  ;;  %3369 = vmatmul.msk.bf16.vlgmr.msrb.gmra.mxu1 %vm379_vm1, %v3954_v40 }
  0xc3   : > { %3370 = vmatmul.msk.bf16.vlgmr.msrb.gmra.mxu2 %vm379_vm1, %v3954_v40  ;;  %1134 = vmatpush.bf16.msrb.mxu1 %v952_v60 }
  0xc4   : > { %3371 = vmatmul.msk.bf16.vlgmr.msrb.gmra.mxu3 %vm379_vm1, %v3954_v40  ;;  %1147 = vmatpush.bf16.msrb.mxu2 %v954_v61 }
  0xc5   : > { %1160 = vmatpush.bf16.msrb.mxu3 %v956_v62  ;;  %1121 = vmatpush.bf16.msrb.mxu0 %v950_v63 }
  0xc6   : > { %v3994_v3 = vpop.f32.mrf.mxu2 }
  0xc7   : > { %v3996_v5 = vpop.f32.mrf.mxu3  ;;  %v479_v6 = vpop.f32.mrf.mxu0 }
  0xc8   : > { %v492_v9 = vpop.f32.mrf.mxu1  ;;  %v1228_v6 = vsel %vm383_vm0, %v1200_v51, 0 }
  0xc9   : > { %v1232_v9 = vsel %vm383_vm0, %v1202_v54, 0  ;;  %v1453_v54 = vld.sshfl [vmem:[#allocation1] sm:$0xff pattern:$0x73625140] }
  0xce   : > { %v505_v12 = vpop.f32.mrf.mxu2 }
  0xcf   : > { %v518_v14 = vpop.f32.mrf.mxu3  ;;  %v3999_v15 = vpop.f32.mrf.mxu0 }
  0xd0   : > { %v4001_v16 = vpop.f32.mrf.mxu1  ;;  %v1204_v14 = vld.sshfl [vmem:[#allocation1 + $0x28] sm:$0xff pattern:$0x73625140] }
  0xd1   : > { %v1236_v30 = vsel %vm383_vm0, %v1204_v14, 0 }
  0xd2   : > { %3372 = vmatmul.msk.bf16.vlgmr.msra.gmra.mxu0 %vm379_vm1, %v3954_v40  ;;  %3373 = vmatmul.msk.bf16.vlgmr.msra.gmra.mxu1 %vm379_vm1, %v3954_v40 }
  0xd3   : > { %3374 = vmatmul.msk.bf16.vlgmr.msra.gmra.mxu2 %vm379_vm1, %v3954_v40  ;;  %1262 = vmatpush.bf16.msra.mxu1 %v1212_v17  ;;  %v1205_v17 = vld.sshfl [vmem:[#allocation1 + $0x30] sm:$0xff pattern:$0x73625140] }
  0xd4   : > { %3375 = vmatmul.msk.bf16.vlgmr.msra.gmra.mxu3 %vm379_vm1, %v3954_v40  ;;  %1275 = vmatpush.bf16.msra.mxu2 %v1214_v18 }
  0xd5   : > { %1288 = vmatpush.bf16.msra.mxu3 %v1216_v19  ;;  %1249 = vmatpush.bf16.msra.mxu0 %v1210_v21  ;;  %v1206_v21 = vld.sshfl [vmem:[#allocation1 + $0x38] sm:$0xff pattern:$0x73625140] }
  0xd6   : > { %v4015_v22 = vpop.f32.mrf.mxu2 }
  0xd7   : > { %v4017_v24 = vpop.f32.mrf.mxu3  ;;  %v531_v25 = vpop.f32.mrf.mxu0 }
  0xd8   : > { %v544_v28 = vpop.f32.mrf.mxu1  ;;  %v1203_v25 = vld.sshfl [vmem:[#allocation1 + $0x20] sm:$0xff pattern:$0x73625140] }
  0xd9   : > { %1452 = vst [vmem:[#allocation1 + $0x20] ss:$4 sm:$0xff] %v3859_v46 }
  0xde   : > { %v557_v31 = vpop.f32.mrf.mxu2 }
  0xdf   : > { %v570_v33 = vpop.f32.mrf.mxu3  ;;  %v4020_v34 = vpop.f32.mrf.mxu0 }
  0xe0   : > { %v4022_v35 = vpop.f32.mrf.mxu1  ;;  %v1240_v33 = vsel %vm383_vm0, %v1206_v21, 0  ;;  %v1457_v21 = vld.sshfl [vmem:[#allocation1 + $0x20] sm:$0xff pattern:$0x73625140] }
  0xe2   : > { %3376 = vmatmul.msk.bf16.vlgmr.msrb.gmra.mxu0 %vm379_vm1, %v3954_v40  ;;  %3377 = vmatmul.msk.bf16.vlgmr.msrb.gmra.mxu1 %vm379_vm1, %v3954_v40 }
  0xe3   : > { %3378 = vmatmul.msk.bf16.vlgmr.msrb.gmra.mxu2 %vm379_vm1, %v3954_v40  ;;  %1314 = vmatpush.bf16.msrb.mxu1 %v1220_v36  ;;  %v1234_v36 = vsel %vm383_vm0, %v1203_v25, 0 }
  0xe4   : > { %3379 = vmatmul.msk.bf16.vlgmr.msrb.gmra.mxu3 %vm379_vm1, %v3954_v40  ;;  %1327 = vmatpush.bf16.msrb.mxu2 %v1222_v41  ;;  %v4044_v40 = vld [vmem:[%s4908_s1 + $0x10] sm:$0xf] }
  0xe5   : > { %1340 = vmatpush.bf16.msrb.mxu3 %v1224_v42  ;;  %1301 = vmatpush.bf16.msrb.mxu0 %v1218_v43  ;;  %v1454_v43 = vld.sshfl [vmem:[#allocation1 + $0x8] sm:$0xff pattern:$0x73625140] }
  0xe6   : > { %v4036_v44 = vpop.f32.mrf.mxu2 }
  0xe7   : > { %v4038_v49 = vpop.f32.mrf.mxu3  ;;  %v583_v50 = vpop.f32.mrf.mxu0 }
  0xe8   : > { %v596_v53 = vpop.f32.mrf.mxu1  ;;  %v1455_v50 = vld.sshfl [vmem:[#allocation1 + $0x10] sm:$0xff pattern:$0x73625140] }
  0xe9   : > { %v1456_v53 = vld.sshfl [vmem:[#allocation1 + $0x18] sm:$0xff pattern:$0x73625140] }
  0xea   : > { %1461 = vst [vmem:[#allocation1] ss:$4 sm:$0xff] %v3875_v55 }
  0xee   : > { %v609_v57 = vpop.f32.mrf.mxu2 }
  0xef   : > { %v622_v60 = vpop.f32.mrf.mxu3  ;;  %v693_v61 = vpop.f32.mrf.mxu0 }
  0xf0   : > { %v4047_v62 = vadd.f32 %v693_v61, %v3947_v38  ;;  %v706_v63 = vpop.f32.mrf.mxu1 }
  0xf1   : > { %v4051_v7 = vadd.f32 %v706_v63, %v3949_v39  ;;  %v1476_v63 = vsel %vm383_vm0, %v1454_v43, 0 }
  0xf2   : > { %3382 = vmatmul.msk.bf16.vlgmr.msra.gmra.mxu0 %vm379_vm1, %v4044_v40  ;;  %3383 = vmatmul.msk.bf16.vlgmr.msra.gmra.mxu1 %vm379_vm1, %v4044_v40 }
  0xf3   : > { %3384 = vmatmul.msk.bf16.vlgmr.msra.gmra.mxu2 %vm379_vm1, %v4044_v40  ;;  %1366 = vmatpush.bf16.msra.mxu1 %v1228_v6 }
  0xf4   : > { %3385 = vmatmul.msk.bf16.vlgmr.msra.gmra.mxu3 %vm379_vm1, %v4044_v40  ;;  %1379 = vmatpush.bf16.msra.mxu2 %v1230_v8  ;;  %v1480_v8 = vsel %vm383_vm0, %v1456_v53, 0  ;;  %v1463_v53 = vld.sshfl [vmem:[#allocation1] sm:$0xff pattern:$0x73625140] }
  0xf5   : > { %1392 = vmatpush.bf16.msra.mxu3 %v1232_v9  ;;  %1353 = vmatpush.bf16.msra.mxu0 %v1226_v10  ;;  %v1474_v9 = vsel %vm383_vm0, %v1453_v54, 0 }
  0xf6   : > { %v719_v38 = vpop.f32.mrf.mxu2 }
  0xf7   : > { %v4065_v39 = vadd.f32 %v719_v38, %v3973_v47  ;;  %v732_v11 = vpop.f32.mrf.mxu3  ;;  %v695_v12 = vpop.f32.mrf.mxu0 }
  0xf8   : > { %v4068_v18 = vadd.f32 %v732_v11, %v3975_v48  ;;  %v708_v19 = vpop.f32.mrf.mxu1  ;;  %v1238_v48 = vsel %vm383_vm0, %v1205_v17, 0  ;;  %v1458_v11 = vld.sshfl [vmem:[#allocation1 + $0x28] sm:$0xff pattern:$0x73625140] }
  0xf9   : > { %v1459_v12 = vld.sshfl [vmem:[#allocation1 + $0x30] sm:$0xff pattern:$0x73625140]  ;;  %v1460_v19 = vld.sshfl [vmem:[#allocation1 + $0x38] sm:$0xff pattern:$0x73625140] }
  0xfa   : > { %1462 = vst [vmem:[#allocation1 + $0x20] ss:$4 sm:$0xff] %v3896_v4 }
  0xfe   : > { %v721_v26 = vpop.f32.mrf.mxu2 }
  0xff   : > { %v734_v27 = vpop.f32.mrf.mxu3  ;;  %v745_v28 = vpop.f32.mrf.mxu0 }
 0x100   : > { %v4072_v29 = vadd.f32 %v745_v28, %v3977_v58  ;;  %v758_v47 = vpop.f32.mrf.mxu1 }
 0x101   : > { %v4076_v31 = vadd.f32 %v758_v47, %v3980_v59  ;;  %v1484_v47 = vsel %vm383_vm0, %v1458_v11, 0 }
 0x102   : > { %3386 = vmatmul.msk.bf16.vlgmr.msrb.gmra.mxu0 %vm379_vm1, %v4044_v40  ;;  %3387 = vmatmul.msk.bf16.vlgmr.msrb.gmra.mxu1 %vm379_vm1, %v4044_v40 }
 0x103   : > { %3388 = vmatmul.msk.bf16.vlgmr.msrb.gmra.mxu2 %vm379_vm1, %v4044_v40  ;;  %1418 = vmatpush.bf16.msrb.mxu1 %v1236_v30 }
 0x104   : > { %3389 = vmatmul.msk.bf16.vlgmr.msrb.gmra.mxu3 %vm379_vm1, %v4044_v40  ;;  %1431 = vmatpush.bf16.msrb.mxu2 %v1238_v48  ;;  %v1488_v48 = vsel %vm383_vm0, %v1460_v19, 0  ;;  %v1467_v19 = vld.sshfl [vmem:[#allocation1 + $0x20] sm:$0xff pattern:$0x73625140] }
 0x105   : > { %1444 = vmatpush.bf16.msrb.mxu3 %v1240_v33  ;;  %1405 = vmatpush.bf16.msrb.mxu0 %v1234_v36  ;;  %v1482_v33 = vsel %vm383_vm0, %v1457_v21, 0 }
 0x106   : > { %v771_v58 = vpop.f32.mrf.mxu2 }
 0x107   : > { %v4090_v59 = vadd.f32 %v771_v58, %v3994_v3  ;;  %v784_v41 = vpop.f32.mrf.mxu3  ;;  %v747_v42 = vpop.f32.mrf.mxu0 }
 0x108   : > { %v4093_v51 = vadd.f32 %v784_v41, %v3996_v5  ;;  %v760_v52 = vpop.f32.mrf.mxu1  ;;  %v1478_v5 = vsel %vm383_vm0, %v1455_v50, 0  ;;  %v1464_v41 = vld.sshfl [vmem:[#allocation1 + $0x8] sm:$0xff pattern:$0x73625140] }
 0x109   : > { %v1465_v42 = vld.sshfl [vmem:[#allocation1 + $0x10] sm:$0xff pattern:$0x73625140]  ;;  %v1466_v52 = vld.sshfl [vmem:[#allocation1 + $0x18] sm:$0xff pattern:$0x73625140] }
 0x10a   : > { %1716 = vst [vmem:[#allocation1] ss:$4 sm:$0xff] %v3912_v13 }
 0x10e   : > { %v773_v56 = vpop.f32.mrf.mxu2 }
 0x10f   : > { %v786_v57 = vpop.f32.mrf.mxu3  ;;  %v797_v60 = vpop.f32.mrf.mxu0 }
 0x110   : > { %v4097_v61 = vadd.f32 %v797_v60, %v3999_v15  ;;  %v810_v3 = vpop.f32.mrf.mxu1 }
 0x111   : > { %v4101_v6 = vadd.f32 %v810_v3, %v4001_v16 }
 0x112   : > { %3390 = vmatmul.msk.bf16.vlgmr.msra.gmra.mxu0 %vm379_vm1, %v4044_v40  ;;  %3391 = vmatmul.msk.bf16.vlgmr.msra.gmra.mxu1 %vm379_vm1, %v4044_v40 }
 0x113   : > { %3392 = vmatmul.msk.bf16.vlgmr.msra.gmra.mxu2 %vm379_vm1, %v4044_v40  ;;  %1526 = vmatpush.bf16.msra.mxu1 %v1476_v63  ;;  %v1494_v63 = vsel %vm383_vm0, %v1465_v42, 0 }
 0x114   : > { %3393 = vmatmul.msk.bf16.vlgmr.msra.gmra.mxu3 %vm379_vm1, %v4044_v40  ;;  %1539 = vmatpush.bf16.msra.mxu2 %v1478_v5  ;;  %v1496_v5 = vsel %vm383_vm0, %v1466_v52, 0  ;;  %v1719_v52 = vld.sshfl [vmem:[#allocation1] sm:$0xff pattern:$0x73625140] }
 0x115   : > { %1552 = vmatpush.bf16.msra.mxu3 %v1480_v8  ;;  %1513 = vmatpush.bf16.msra.mxu0 %v1474_v9  ;;  %v1490_v8 = vsel %vm383_vm0, %v1463_v53, 0 }
 0x116   : > { %v823_v15 = vpop.f32.mrf.mxu2 }
 0x117   : > { %v4115_v16 = vadd.f32 %v823_v15, %v4015_v22  ;;  %v836_v10 = vpop.f32.mrf.mxu3  ;;  %v799_v38 = vpop.f32.mrf.mxu0 }
 0x118   : > { %v4118_v14 = vadd.f32 %v836_v10, %v4017_v24  ;;  %v812_v17 = vpop.f32.mrf.mxu1  ;;  %v1486_v24 = vsel %vm383_vm0, %v1459_v12, 0  ;;  %v1468_v10 = vld.sshfl [vmem:[#allocation1 + $0x28] sm:$0xff pattern:$0x73625140] }
 0x119   : > { %v1469_v38 = vld.sshfl [vmem:[#allocation1 + $0x30] sm:$0xff pattern:$0x73625140]  ;;  %v1470_v17 = vld.sshfl [vmem:[#allocation1 + $0x38] sm:$0xff pattern:$0x73625140] }
 0x11a   : > { %1718 = vst [vmem:[#allocation1 + $0x20] ss:$4 sm:$0xff] %v3928_v23 }
 0x11e   : > { %v825_v25 = vpop.f32.mrf.mxu2 }
 0x11f   : > { %v838_v26 = vpop.f32.mrf.mxu3  ;;  %v849_v27 = vpop.f32.mrf.mxu0 }
 0x120   : > { %v4122_v28 = vadd.f32 %v849_v27, %v4020_v34  ;;  %v862_v22 = vpop.f32.mrf.mxu1 }
 0x121   : > { %v4126_v30 = vadd.f32 %v862_v22, %v4022_v35  ;;  %v1500_v22 = vsel %vm383_vm0, %v1468_v10, 0 }
 0x122   : > { %3394 = vmatmul.msk.bf16.vlgmr.msrb.gmra.mxu0 %vm379_vm1, %v4044_v40  ;;  %3395 = vmatmul.msk.bf16.vlgmr.msrb.gmra.mxu1 %vm379_vm1, %v4044_v40 }
 0x123   : > { %3396 = vmatmul.msk.bf16.vlgmr.msrb.gmra.mxu2 %vm379_vm1, %v4044_v40  ;;  %1578 = vmatpush.bf16.msrb.mxu1 %v1484_v47 }
 0x124   : > { %3397 = vmatmul.msk.bf16.vlgmr.msrb.gmra.mxu3 %vm379_vm1, %v4044_v40  ;;  %1591 = vmatpush.bf16.msrb.mxu2 %v1486_v24  ;;  %v1504_v24 = vsel %vm383_vm0, %v1470_v17, 0  ;;  %v1723_v17 = vld.sshfl [vmem:[#allocation1 + $0x20] sm:$0xff pattern:$0x73625140] }
 0x125   : > { %1604 = vmatpush.bf16.msrb.mxu3 %v1488_v48  ;;  %1565 = vmatpush.bf16.msrb.mxu0 %v1482_v33  ;;  %v1498_v48 = vsel %vm383_vm0, %v1467_v19, 0 }
 0x126   : > { %v875_v34 = vpop.f32.mrf.mxu2 }
 0x127   : > { %v4140_v35 = vadd.f32 %v875_v34, %v4036_v44  ;;  %v888_v36 = vpop.f32.mrf.mxu3  ;;  %v851_v58 = vpop.f32.mrf.mxu0  ;;  %v4149_v44 = vld [vmem:[%s4908_s1 + $0x4] sm:$0xf] }
 0x128   : > { %v4143_v43 = vadd.f32 %v888_v36, %v4038_v49  ;;  %v864_v50 = vpop.f32.mrf.mxu1  ;;  %v1492_v49 = vsel %vm383_vm0, %v1464_v41, 0  ;;  %v1720_v36 = vld.sshfl [vmem:[#allocation1 + $0x8] sm:$0xff pattern:$0x73625140] }
 0x129   : > { %v1721_v58 = vld.sshfl [vmem:[#allocation1 + $0x10] sm:$0xff pattern:$0x73625140]  ;;  %v1722_v50 = vld.sshfl [vmem:[#allocation1 + $0x18] sm:$0xff pattern:$0x73625140] }
 0x12a   : > { %1727 = vst [vmem:[#allocation1] ss:$4 sm:$0xff] %v3944_v32 }
 0x12e   : > { %v877_v40 = vpop.f32.mrf.mxu2 }
 0x12f   : > { %v890_v54 = vpop.f32.mrf.mxu3  ;;  %v967_v56 = vpop.f32.mrf.mxu0 }
 0x130   : > { %v4152_v57 = vadd.f32 %v967_v56, %v4047_v62  ;;  %v980_v60 = vpop.f32.mrf.mxu1 }
 0x131   : > { %v4156_v3 = vadd.f32 %v980_v60, %v4051_v7  ;;  %v1742_v60 = vsel %vm383_vm0, %v1720_v36, 0 }
 0x132   : > { %3398 = vmatmul.msk.bf16.vlgmr.msra.gmra.mxu0 %vm379_vm1, %v4149_v44  ;;  %3399 = vmatmul.msk.bf16.vlgmr.msra.gmra.mxu1 %vm379_vm1, %v4149_v44 }
 0x133   : > { %3400 = vmatmul.msk.bf16.vlgmr.msra.gmra.mxu2 %vm379_vm1, %v4149_v44  ;;  %1630 = vmatpush.bf16.msra.mxu1 %v1492_v49 }
 0x134   : > { %3401 = vmatmul.msk.bf16.vlgmr.msra.gmra.mxu3 %vm379_vm1, %v4149_v44  ;;  %1643 = vmatpush.bf16.msra.mxu2 %v1494_v63  ;;  %v1746_v63 = vsel %vm383_vm0, %v1722_v50, 0  ;;  %v1729_v50 = vld.sshfl [vmem:[#allocation1] sm:$0xff pattern:$0x73625140] }
 0x135   : > { %1656 = vmatpush.bf16.msra.mxu3 %v1496_v5  ;;  %1617 = vmatpush.bf16.msra.mxu0 %v1490_v8  ;;  %v1740_v5 = vsel %vm383_vm0, %v1719_v52, 0 }
 0x136   : > { %v993_v62 = vpop.f32.mrf.mxu2 }
 0x137   : > { %v4170_v7 = vadd.f32 %v993_v62, %v4065_v39  ;;  %v1006_v9 = vpop.f32.mrf.mxu3  ;;  %v969_v15 = vpop.f32.mrf.mxu0 }
 0x138   : > { %v4173_v11 = vadd.f32 %v1006_v9, %v4068_v18  ;;  %v982_v12 = vpop.f32.mrf.mxu1  ;;  %v1502_v18 = vsel %vm383_vm0, %v1469_v38, 0  ;;  %v1724_v9 = vld.sshfl [vmem:[#allocation1 + $0x28] sm:$0xff pattern:$0x73625140] }
 0x139   : > { %v1725_v15 = vld.sshfl [vmem:[#allocation1 + $0x30] sm:$0xff pattern:$0x73625140]  ;;  %v1726_v12 = vld.sshfl [vmem:[#allocation1 + $0x38] sm:$0xff pattern:$0x73625140] }
 0x13a   : > { %1728 = vst [vmem:[#allocation1 + $0x20] ss:$4 sm:$0xff] %v3970_v45 }
 0x13e   : > { %v995_v21 = vpop.f32.mrf.mxu2 }
 0x13f   : > { %v1008_v25 = vpop.f32.mrf.mxu3  ;;  %v1019_v26 = vpop.f32.mrf.mxu0 }
 0x140   : > { %v4177_v27 = vadd.f32 %v1019_v26, %v4072_v29  ;;  %v1032_v39 = vpop.f32.mrf.mxu1 }
 0x141   : > { %v4181_v47 = vadd.f32 %v1032_v39, %v4076_v31  ;;  %v1750_v39 = vsel %vm383_vm0, %v1724_v9, 0  ;;  %v1733_v9 = vld.sshfl [vmem:[#allocation1 + $0x20] sm:$0xff pattern:$0x73625140] }
 0x142   : > { %3402 = vmatmul.msk.bf16.vlgmr.msrb.gmra.mxu0 %vm379_vm1, %v4149_v44  ;;  %3403 = vmatmul.msk.bf16.vlgmr.msrb.gmra.mxu1 %vm379_vm1, %v4149_v44 }
 0x143   : > { %3404 = vmatmul.msk.bf16.vlgmr.msrb.gmra.mxu2 %vm379_vm1, %v4149_v44  ;;  %1682 = vmatpush.bf16.msrb.mxu1 %v1500_v22 }
 0x144   : > { %3405 = vmatmul.msk.bf16.vlgmr.msrb.gmra.mxu3 %vm379_vm1, %v4149_v44  ;;  %1695 = vmatpush.bf16.msrb.mxu2 %v1502_v18  ;;  %v1754_v18 = vsel %vm383_vm0, %v1726_v12, 0 }
 0x145   : > { %1708 = vmatpush.bf16.msrb.mxu3 %v1504_v24  ;;  %1669 = vmatpush.bf16.msrb.mxu0 %v1498_v48  ;;  %v1748_v24 = vsel %vm383_vm0, %v1723_v17, 0 }
 0x146   : > { %v1045_v29 = vpop.f32.mrf.mxu2 }
 0x147   : > { %v4195_v31 = vadd.f32 %v1045_v29, %v4090_v59  ;;  %v1058_v33 = vpop.f32.mrf.mxu3  ;;  %v1021_v34 = vpop.f32.mrf.mxu0 }
 0x148   : > { %v4198_v41 = vadd.f32 %v1058_v33, %v4093_v51  ;;  %v1034_v42 = vpop.f32.mrf.mxu1  ;;  %v1744_v51 = vsel %vm383_vm0, %v1721_v58, 0  ;;  %v1730_v33 = vld.sshfl [vmem:[#allocation1 + $0x8] sm:$0xff pattern:$0x73625140] }
 0x149   : > { %v1731_v34 = vld.sshfl [vmem:[#allocation1 + $0x10] sm:$0xff pattern:$0x73625140]  ;;  %v1732_v42 = vld.sshfl [vmem:[#allocation1 + $0x18] sm:$0xff pattern:$0x73625140] }
 0x14a   : > { %2067 = vst [vmem:[#allocation1] ss:$4 sm:$0xff] %v3790_v0  ;;  %v1762_v0 = vsel %vm383_vm0, %v1732_v42, 0 }
 0x14e   : > { %v1047_v53 = vpop.f32.mrf.mxu2 }
 0x14f   : > { %v1060_v40 = vpop.f32.mrf.mxu3  ;;  %v1071_v54 = vpop.f32.mrf.mxu0 }
 0x150   : > { %v4202_v56 = vadd.f32 %v1071_v54, %v4097_v61  ;;  %v1084_v59 = vpop.f32.mrf.mxu1  ;;  %v1758_v54 = vsel %vm383_vm0, %v1730_v33, 0 }
 0x151   : > { %v4206_v49 = vadd.f32 %v1084_v59, %v4101_v6  ;;  %v1756_v59 = vsel %vm383_vm0, %v1729_v50, 0 }
 0x152   : > { %3406 = vmatmul.msk.bf16.vlgmr.msra.gmra.mxu0 %vm379_vm1, %v4149_v44  ;;  %3407 = vmatmul.msk.bf16.vlgmr.msra.gmra.mxu1 %vm379_vm1, %v4149_v44 }
 0x153   : > { %3408 = vmatmul.msk.bf16.vlgmr.msra.gmra.mxu2 %vm379_vm1, %v4149_v44  ;;  %1792 = vmatpush.bf16.msra.mxu1 %v1742_v60 }
 0x154   : > { %3409 = vmatmul.msk.bf16.vlgmr.msra.gmra.mxu3 %vm379_vm1, %v4149_v44  ;;  %1805 = vmatpush.bf16.msra.mxu2 %v1744_v51 }
 0x155   : > { %1818 = vmatpush.bf16.msra.mxu3 %v1746_v63  ;;  %1779 = vmatpush.bf16.msra.mxu0 %v1740_v5  ;;  %v1734_v5 = vld.sshfl [vmem:[#allocation1 + $0x28] sm:$0xff pattern:$0x73625140] }
 0x156   : > { %v1097_v61 = vpop.f32.mrf.mxu2 }
 0x157   : > { %v4220_v6 = vadd.f32 %v1097_v61, %v4115_v16  ;;  %v1110_v8 = vpop.f32.mrf.mxu3  ;;  %v1073_v62 = vpop.f32.mrf.mxu0  ;;  %v1735_v61 = vld.sshfl [vmem:[#allocation1 + $0x30] sm:$0xff pattern:$0x73625140] }
 0x158   : > { %v4223_v10 = vadd.f32 %v1110_v8, %v4118_v14  ;;  %v1086_v38 = vpop.f32.mrf.mxu1  ;;  %v1752_v14 = vsel %vm383_vm0, %v1725_v15, 0  ;;  %v1736_v62 = vld.sshfl [vmem:[#allocation1 + $0x38] sm:$0xff pattern:$0x73625140] }
 0x159   : > { %4920 = vst [vmem:[#allocation10_spill] sm:$0xff] %v4220_v6 }
 0x15a   : > { %4921 = vst [vmem:[#allocation11_spill] sm:$0xff] %v4223_v10 }
 0x15b   : > { %2069 = vst [vmem:[#allocation1 + $0x20] ss:$4 sm:$0xff] %v3793_v1  ;;  %v1764_v1 = vsel %vm383_vm0, %v1733_v9, 0 }
 0x15e   : > { %v1099_v19 = vpop.f32.mrf.mxu2 }
 0x15f   : > { %v1112_v21 = vpop.f32.mrf.mxu3  ;;  %v1123_v25 = vpop.f32.mrf.mxu0  ;;  %v1766_v19 = vsel %vm383_vm0, %v1734_v5, 0 }
 0x160   : > { %v4227_v26 = vadd.f32 %v1123_v25, %v4122_v28  ;;  %v1136_v16 = vpop.f32.mrf.mxu1  ;;  %v1768_v21 = vsel %vm383_vm0, %v1735_v61, 0  ;;  %v1770_v25 = vsel %vm383_vm0, %v1736_v62, 0 }
 0x161   : > { %v4231_v22 = vadd.f32 %v1136_v16, %v4126_v30 }
 0x162   : > { %4922 = vst [vmem:[#allocation12_spill] sm:$0xff] %v4227_v26  ;;  %3410 = vmatmul.msk.bf16.vlgmr.msrb.gmra.mxu0 %vm379_vm1, %v4149_v44  ;;  %3411 = vmatmul.msk.bf16.vlgmr.msrb.gmra.mxu1 %vm379_vm1, %v4149_v44  ;;  %v2077_v61 = vld.sshfl [vmem:[#allocation1 + $0x38] sm:$0xff pattern:$0x73625140] }
 0x163   : > { %4923 = vst [vmem:[#allocation13_spill] sm:$0xff] %v4231_v22  ;;  %3412 = vmatmul.msk.bf16.vlgmr.msrb.gmra.mxu2 %vm379_vm1, %v4149_v44  ;;  %1844 = vmatpush.bf16.msrb.mxu1 %v1750_v39 }
 0x164   : > { %3413 = vmatmul.msk.bf16.vlgmr.msrb.gmra.mxu3 %vm379_vm1, %v4149_v44  ;;  %1857 = vmatpush.bf16.msrb.mxu2 %v1752_v14 }
 0x165   : > { %1870 = vmatpush.bf16.msrb.mxu3 %v1754_v18  ;;  %1831 = vmatpush.bf16.msrb.mxu0 %v1748_v24  ;;  %v2071_v18 = vld.sshfl [vmem:[#allocation1 + $0x8] sm:$0xff pattern:$0x73625140]  ;;  %v2072_v24 = vld.sshfl [vmem:[#allocation1 + $0x10] sm:$0xff pattern:$0x73625140] }
 0x166   : > { %v1149_v28 = vpop.f32.mrf.mxu2  ;;  %v2093_v50 = vsel %vm383_vm0, %v2071_v18, 0 }
 0x167   : > { %v4245_v30 = vadd.f32 %v1149_v28, %v4140_v35  ;;  %v1162_v48 = vpop.f32.mrf.mxu3  ;;  %v1125_v29 = vpop.f32.mrf.mxu0  ;;  %v4256_v35 = vld [vmem:[%s4908_s1 + $0x1c] sm:$0xf] }
 0x168   : > { %v4248_v36 = vadd.f32 %v1162_v48, %v4143_v43  ;;  %v1138_v58 = vpop.f32.mrf.mxu1  ;;  %v1760_v43 = vsel %vm383_vm0, %v1731_v34, 0  ;;  %v2073_v48 = vld.sshfl [vmem:[#allocation1 + $0x18] sm:$0xff pattern:$0x73625140] }
 0x169   : > { %4924 = vst [vmem:[#allocation14_spill] sm:$0xff] %v4245_v30  ;;  %v2070_v29 = vld.sshfl [vmem:[#allocation1] sm:$0xff pattern:$0x73625140] }
 0x16a   : > { %4925 = vst [vmem:[#allocation15_spill] sm:$0xff] %v4248_v36 }
 0x16b   : > { %2078 = vst [vmem:[#allocation1] ss:$4 sm:$0xff] %v3798_v2  ;;  %v2091_v2 = vsel %vm383_vm0, %v2070_v29, 0 }
 0x16e   : > { %v1151_v44 = vpop.f32.mrf.mxu2 }
 0x16f   : > { %v1164_v52 = vpop.f32.mrf.mxu3  ;;  %v4251_v53 = vpop.f32.mrf.mxu0  ;;  %v2095_v44 = vsel %vm383_vm0, %v2072_v24, 0 }
 0x170   : > { %v4258_v40 = vpop.f32.mrf.mxu1  ;;  %v2097_v52 = vsel %vm383_vm0, %v2073_v48, 0 }
 0x172   : > { %3415 = vmatmul.msk.bf16.vlgmr.msra.gmra.mxu0 %vm379_vm1, %v4256_v35  ;;  %3416 = vmatmul.msk.bf16.vlgmr.msra.gmra.mxu1 %vm379_vm1, %v4256_v35  ;;  %v2081_v24 = vld.sshfl [vmem:[#allocation1 + $0x8] sm:$0xff pattern:$0x73625140]  ;;  %v2083_v29 = vld.sshfl [vmem:[#allocation1 + $0x18] sm:$0xff pattern:$0x73625140] }
 0x173   : > { %3417 = vmatmul.msk.bf16.vlgmr.msra.gmra.mxu2 %vm379_vm1, %v4256_v35  ;;  %1896 = vmatpush.bf16.msra.mxu1 %v1758_v54 }
 0x174   : > { %3418 = vmatmul.msk.bf16.vlgmr.msra.gmra.mxu3 %vm379_vm1, %v4256_v35  ;;  %1909 = vmatpush.bf16.msra.mxu2 %v1760_v43 }
 0x175   : > { %1922 = vmatpush.bf16.msra.mxu3 %v1762_v0  ;;  %1883 = vmatpush.bf16.msra.mxu0 %v1756_v59  ;;  %v2075_v59 = vld.sshfl [vmem:[#allocation1 + $0x28] sm:$0xff pattern:$0x73625140] }
 0x176   : > { %v4272_v60 = vpop.f32.mrf.mxu2 }
 0x177   : > { %v4274_v51 = vpop.f32.mrf.mxu3  ;;  %v1253_v63 = vpop.f32.mrf.mxu0 }
 0x178   : > { %v1266_v8 = vpop.f32.mrf.mxu1  ;;  %v2076_v63 = vld.sshfl [vmem:[#allocation1 + $0x30] sm:$0xff pattern:$0x73625140] }
 0x179   : > { %v2074_v8 = vld.sshfl [vmem:[#allocation1 + $0x20] sm:$0xff pattern:$0x73625140] }
 0x17a   : > { %2079 = vst [vmem:[#allocation1 + $0x20] ss:$4 sm:$0xff] %v3823_v20  ;;  %v2099_v20 = vsel %vm383_vm0, %v2074_v8, 0 }
 0x17e   : > { %v1279_v15 = vpop.f32.mrf.mxu2 }
 0x17f   : > { %v1292_v38 = vpop.f32.mrf.mxu3  ;;  %v4277_v12 = vpop.f32.mrf.mxu0 }
 0x180   : > { %v4279_v17 = vpop.f32.mrf.mxu1 }
 0x181   : > { %v2085_v8 = vld.sshfl [vmem:[#allocation1 + $0x28] sm:$0xff pattern:$0x73625140] }
 0x182   : > { %3419 = vmatmul.msk.bf16.vlgmr.msrb.gmra.mxu0 %vm379_vm1, %v4256_v35  ;;  %3420 = vmatmul.msk.bf16.vlgmr.msrb.gmra.mxu1 %vm379_vm1, %v4256_v35 }
 0x183   : > { %3421 = vmatmul.msk.bf16.vlgmr.msrb.gmra.mxu2 %vm379_vm1, %v4256_v35  ;;  %1948 = vmatpush.bf16.msrb.mxu1 %v1766_v19  ;;  %v2101_v19 = vsel %vm383_vm0, %v2075_v59, 0 }
 0x184   : > { %3422 = vmatmul.msk.bf16.vlgmr.msrb.gmra.mxu3 %vm379_vm1, %v4256_v35  ;;  %1961 = vmatpush.bf16.msrb.mxu2 %v1768_v21  ;;  %v2103_v21 = vsel %vm383_vm0, %v2076_v63, 0 }
 0x185   : > { %1974 = vmatpush.bf16.msrb.mxu3 %v1770_v25  ;;  %1935 = vmatpush.bf16.msrb.mxu0 %v1764_v1  ;;  %v2105_v25 = vsel %vm383_vm0, %v2077_v61, 0 }
 0x186   : > { %v4293_v16 = vpop.f32.mrf.mxu2 }
 0x187   : > { %v4295_v39 = vpop.f32.mrf.mxu3  ;;  %v1305_v14 = vpop.f32.mrf.mxu0 }
 0x188   : > { %v1318_v28 = vpop.f32.mrf.mxu1 }
 0x189   : > { %v2082_v28 = vld.sshfl [vmem:[#allocation1 + $0x10] sm:$0xff pattern:$0x73625140] }
 0x18a   : > { %v2111_v59 = vsel %vm383_vm0, %v2082_v28, 0 }
 0x18e   : > { %v1331_v33 = vpop.f32.mrf.mxu2 }
 0x18f   : > { %v1344_v34 = vpop.f32.mrf.mxu3  ;;  %v4298_v58 = vpop.f32.mrf.mxu0  ;;  %v2080_v33 = vld.sshfl [vmem:[#allocation1] sm:$0xff pattern:$0x73625140] }
 0x190   : > { %v4300_v42 = vpop.f32.mrf.mxu1  ;;  %2331 = vst [vmem:[#allocation1] ss:$4 sm:$0xff] %v3843_v37  ;;  %v2113_v37 = vsel %vm383_vm0, %v2083_v29, 0  ;;  %v2107_v63 = vsel %vm383_vm0, %v2080_v33, 0  ;;  %v2117_v29 = vsel %vm383_vm0, %v2085_v8, 0 }
 0x192   : > { %3423 = vmatmul.msk.bf16.vlgmr.msra.gmra.mxu0 %vm379_vm1, %v4256_v35  ;;  %3424 = vmatmul.msk.bf16.vlgmr.msra.gmra.mxu1 %vm379_vm1, %v4256_v35 }
 0x193   : > { %3425 = vmatmul.msk.bf16.vlgmr.msra.gmra.mxu2 %vm379_vm1, %v4256_v35  ;;  %2143 = vmatpush.bf16.msra.mxu1 %v2093_v50 }
 0x194   : > { %3426 = vmatmul.msk.bf16.vlgmr.msra.gmra.mxu3 %vm379_vm1, %v4256_v35  ;;  %2156 = vmatpush.bf16.msra.mxu2 %v2095_v44 }
 0x195   : > { %2169 = vmatpush.bf16.msra.mxu3 %v2097_v52  ;;  %2130 = vmatpush.bf16.msra.mxu0 %v2091_v2  ;;  %v2109_v2 = vsel %vm383_vm0, %v2081_v24, 0 }
 0x196   : > { %v4314_v54 = vpop.f32.mrf.mxu2 }
 0x197   : > { %v4316_v43 = vpop.f32.mrf.mxu3  ;;  %v1357_v0 = vpop.f32.mrf.mxu0 }
 0x198   : > { %v1370_v5 = vpop.f32.mrf.mxu1 }
 0x19e   : > { %v1383_v62 = vpop.f32.mrf.mxu2 }
 0x19f   : > { %v1396_v9 = vpop.f32.mrf.mxu3  ;;  %v4319_v15 = vpop.f32.mrf.mxu0  ;;  %v2086_v62 = vld.sshfl [vmem:[#allocation1 + $0x30] sm:$0xff pattern:$0x73625140] }
 0x1a0   : > { %v4321_v38 = vpop.f32.mrf.mxu1  ;;  %v2119_v33 = vsel %vm383_vm0, %v2086_v62, 0 }
 0x1a2   : > { %3427 = vmatmul.msk.bf16.vlgmr.msrb.gmra.mxu0 %vm379_vm1, %v4256_v35  ;;  %3428 = vmatmul.msk.bf16.vlgmr.msrb.gmra.mxu1 %vm379_vm1, %v4256_v35 }
 0x1a3   : > { %3429 = vmatmul.msk.bf16.vlgmr.msrb.gmra.mxu2 %vm379_vm1, %v4256_v35  ;;  %2195 = vmatpush.bf16.msrb.mxu1 %v2101_v19 }
 0x1a4   : > { %3430 = vmatmul.msk.bf16.vlgmr.msrb.gmra.mxu3 %vm379_vm1, %v4256_v35  ;;  %2208 = vmatpush.bf16.msrb.mxu2 %v2103_v21  ;;  %v4345_v35 = vld [vmem:[%s4908_s1 + $0x14] sm:$0xf]  ;;  %v2087_v21 = vld.sshfl [vmem:[#allocation1 + $0x38] sm:$0xff pattern:$0x73625140] }
 0x1a5   : > { %2221 = vmatpush.bf16.msrb.mxu3 %v2105_v25  ;;  %2182 = vmatpush.bf16.msrb.mxu0 %v2099_v20  ;;  %v2084_v25 = vld.sshfl [vmem:[#allocation1 + $0x20] sm:$0xff pattern:$0x73625140] }
 0x1a6   : > { %v4335_v1 = vpop.f32.mrf.mxu2  ;;  %2333 = vst [vmem:[#allocation1 + $0x20] ss:$4 sm:$0xff] %v3859_v46  ;;  %v2121_v46 = vsel %vm383_vm0, %v2087_v21, 0 }
 0x1a7   : > { %v4337_v14 = vpop.f32.mrf.mxu3  ;;  %v1409_v18 = vpop.f32.mrf.mxu0 }
 0x1a8   : > { %v1422_v48 = vpop.f32.mrf.mxu1 }
 0x1ae   : > { %v1435_v34 = vpop.f32.mrf.mxu2 }
 0x1af   : > { %v1448_v50 = vpop.f32.mrf.mxu3  ;;  %v4340_v44 = vpop.f32.mrf.mxu0 }
 0x1b0   : > { %v1528_v52 = vpop.f32.mrf.mxu1 }
 0x1b1   : > { %v4349_v0 = vadd.f32 %v1528_v52, %v4258_v40  ;;  %v2335_v52 = vld.sshfl [vmem:[#allocation1 + $0x8] sm:$0xff pattern:$0x73625140] }
 0x1b2   : > { %3433 = vmatmul.msk.bf16.vlgmr.msra.gmra.mxu0 %vm379_vm1, %v4345_v35  ;;  %3434 = vmatmul.msk.bf16.vlgmr.msra.gmra.mxu1 %vm379_vm1, %v4345_v35 }
 0x1b3   : > { %3435 = vmatmul.msk.bf16.vlgmr.msra.gmra.mxu2 %vm379_vm1, %v4345_v35  ;;  %2247 = vmatpush.bf16.msra.mxu1 %v2109_v2  ;;  %v2336_v2 = vld.sshfl [vmem:[#allocation1 + $0x10] sm:$0xff pattern:$0x73625140] }
 0x1b4   : > { %3436 = vmatmul.msk.bf16.vlgmr.msra.gmra.mxu3 %vm379_vm1, %v4345_v35  ;;  %2260 = vmatpush.bf16.msra.mxu2 %v2111_v59 }
 0x1b5   : > { %2273 = vmatpush.bf16.msra.mxu3 %v2113_v37  ;;  %2234 = vmatpush.bf16.msra.mxu0 %v2107_v63  ;;  %v2337_v63 = vld.sshfl [vmem:[#allocation1 + $0x18] sm:$0xff pattern:$0x73625140] }
 0x1b6   : > { %v4362_v40 = vpop.f32.mrf.mxu2 }
 0x1b7   : > { %v1554_v5 = vpop.f32.mrf.mxu3  ;;  %v1517_v61 = vpop.f32.mrf.mxu0 }
 0x1b8   : > { %v4365_v9 = vadd.f32 %v1554_v5, %v4274_v51  ;;  %v1530_v19 = vpop.f32.mrf.mxu1  ;;  %v2115_v51 = vsel %vm383_vm0, %v2084_v25, 0  ;;  %v2334_v5 = vld.sshfl [vmem:[#allocation1] sm:$0xff pattern:$0x73625140]  ;;  %v2357_v25 = vsel %vm383_vm0, %v2335_v52, 0 }
 0x1b9   : > { %2342 = vst [vmem:[#allocation1] ss:$4 sm:$0xff] %v3875_v55  ;;  %v2361_v55 = vsel %vm383_vm0, %v2337_v63, 0 }
 0x1be   : > { %v1543_v20 = vpop.f32.mrf.mxu2 }
 0x1bf   : > { %v1556_v18 = vpop.f32.mrf.mxu3  ;;  %v1567_v24 = vpop.f32.mrf.mxu0  ;;  %v2359_v20 = vsel %vm383_vm0, %v2336_v2, 0 }
 0x1c0   : > { %v4369_v28 = vadd.f32 %v1567_v24, %v4277_v12  ;;  %v4371_v48 = vpop.f32.mrf.mxu1 }
 0x1c2   : > { %3437 = vmatmul.msk.bf16.vlgmr.msrb.gmra.mxu0 %vm379_vm1, %v4345_v35  ;;  %3438 = vmatmul.msk.bf16.vlgmr.msrb.gmra.mxu1 %vm379_vm1, %v4345_v35 }
 0x1c3   : > { %3439 = vmatmul.msk.bf16.vlgmr.msrb.gmra.mxu2 %vm379_vm1, %v4345_v35  ;;  %2299 = vmatpush.bf16.msrb.mxu1 %v2117_v29 }
 0x1c4   : > { %3440 = vmatmul.msk.bf16.vlgmr.msrb.gmra.mxu3 %vm379_vm1, %v4345_v35  ;;  %2312 = vmatpush.bf16.msrb.mxu2 %v2119_v33 }
 0x1c5   : > { %2325 = vmatpush.bf16.msrb.mxu3 %v2121_v46  ;;  %2286 = vmatpush.bf16.msrb.mxu0 %v2115_v51  ;;  %v2339_v46 = vld.sshfl [vmem:[#allocation1 + $0x28] sm:$0xff pattern:$0x73625140]  ;;  %v2340_v51 = vld.sshfl [vmem:[#allocation1 + $0x30] sm:$0xff pattern:$0x73625140] }
 0x1c6   : > { %v4385_v12 = vpop.f32.mrf.mxu2 }
 0x1c7   : > { %v1606_v34 = vpop.f32.mrf.mxu3  ;;  %v1569_v50 = vpop.f32.mrf.mxu0 }
 0x1c8   : > { %v4388_v59 = vadd.f32 %v1606_v34, %v4295_v39  ;;  %v1582_v37 = vpop.f32.mrf.mxu1  ;;  %v2355_v39 = vsel %vm383_vm0, %v2334_v5, 0  ;;  %v2341_v34 = vld.sshfl [vmem:[#allocation1 + $0x38] sm:$0xff pattern:$0x73625140]  ;;  %v2365_v5 = vsel %vm383_vm0, %v2339_v46, 0 }
 0x1c9   : > { %v2338_v50 = vld.sshfl [vmem:[#allocation1 + $0x20] sm:$0xff pattern:$0x73625140] }
 0x1ca   : > { %2343 = vst [vmem:[#allocation1 + $0x20] ss:$4 sm:$0xff] %v3896_v4  ;;  %v2363_v4 = vsel %vm383_vm0, %v2338_v50, 0  ;;  %v4441_v50 = vld [vmem:[%s4908_s1 + $0x8] sm:$0xf] }
 0x1ce   : > { %v1595_v61 = vpop.f32.mrf.mxu2 }
 0x1cf   : > { %v1608_v8 = vpop.f32.mrf.mxu3  ;;  %v1619_v62 = vpop.f32.mrf.mxu0  ;;  %v2367_v61 = vsel %vm383_vm0, %v2340_v51, 0 }
 0x1d0   : > { %v4392_v19 = vadd.f32 %v1619_v62, %v4298_v58  ;;  %v4394_v21 = vpop.f32.mrf.mxu1 }
 0x1d2   : > { %3441 = vmatmul.msk.bf16.vlgmr.msra.gmra.mxu0 %vm379_vm1, %v4345_v35  ;;  %3442 = vmatmul.msk.bf16.vlgmr.msra.gmra.mxu1 %vm379_vm1, %v4345_v35 }
 0x1d3   : > { %3443 = vmatmul.msk.bf16.vlgmr.msra.gmra.mxu2 %vm379_vm1, %v4345_v35  ;;  %2407 = vmatpush.bf16.msra.mxu1 %v2357_v25 }
 0x1d4   : > { %3444 = vmatmul.msk.bf16.vlgmr.msra.gmra.mxu3 %vm379_vm1, %v4345_v35  ;;  %2420 = vmatpush.bf16.msra.mxu2 %v2359_v20 }
 0x1d5   : > { %2433 = vmatpush.bf16.msra.mxu3 %v2361_v55  ;;  %2394 = vmatpush.bf16.msra.mxu0 %v2355_v39  ;;  %v2345_v39 = vld.sshfl [vmem:[#allocation1 + $0x8] sm:$0xff pattern:$0x73625140] }
 0x1d6   : > { %v4408_v58 = vpop.f32.mrf.mxu2 }
 0x1d7   : > { %v1658_v18 = vpop.f32.mrf.mxu3  ;;  %v1621_v24 = vpop.f32.mrf.mxu0 }
 0x1d8   : > { %v4411_v29 = vadd.f32 %v1658_v18, %v4316_v43  ;;  %v1634_v33 = vpop.f32.mrf.mxu1  ;;  %v2369_v43 = vsel %vm383_vm0, %v2341_v34, 0  ;;  %v2346_v18 = vld.sshfl [vmem:[#allocation1 + $0x10] sm:$0xff pattern:$0x73625140] }
 0x1d9   : > { %v2347_v24 = vld.sshfl [vmem:[#allocation1 + $0x18] sm:$0xff pattern:$0x73625140]  ;;  %v2344_v33 = vld.sshfl [vmem:[#allocation1] sm:$0xff pattern:$0x73625140] }
 0x1da   : > { %2597 = vst [vmem:[#allocation1] ss:$4 sm:$0xff] %v3912_v13  ;;  %v2375_v13 = vsel %vm383_vm0, %v2346_v18, 0  ;;  %v2351_v18 = vld.sshfl [vmem:[#allocation1 + $0x38] sm:$0xff pattern:$0x73625140] }
 0x1de   : > { %v1647_v52 = vpop.f32.mrf.mxu2 }
 0x1df   : > { %v1660_v2 = vpop.f32.mrf.mxu3  ;;  %v4414_v37 = vpop.f32.mrf.mxu0 }
 0x1e0   : > { %v4416_v63 = vpop.f32.mrf.mxu1  ;;  %v2373_v2 = vsel %vm383_vm0, %v2345_v39, 0 }
 0x1e2   : > { %3445 = vmatmul.msk.bf16.vlgmr.msrb.gmra.mxu0 %vm379_vm1, %v4345_v35  ;;  %3446 = vmatmul.msk.bf16.vlgmr.msrb.gmra.mxu1 %vm379_vm1, %v4345_v35 }
 0x1e3   : > { %3447 = vmatmul.msk.bf16.vlgmr.msrb.gmra.mxu2 %vm379_vm1, %v4345_v35  ;;  %2459 = vmatpush.bf16.msrb.mxu1 %v2365_v5  ;;  %v1542_v5 = vadd.f32 %v4362_v40, %v4272_v60  ;;  %v1581_v40 = vadd.f32 %v4371_v48, %v4279_v17  ;;  %v2385_v17 = vsel %vm383_vm0, %v2351_v18, 0  ;;  %v1594_v48 = vadd.f32 %v4385_v12, %v4293_v16 }
 0x1e4   : > { %3448 = vmatmul.msk.bf16.vlgmr.msrb.gmra.mxu3 %vm379_vm1, %v4345_v35  ;;  %2472 = vmatpush.bf16.msrb.mxu2 %v2367_v61  ;;  %v1516_v35 = vadd.f32 %v4340_v44, %v4251_v53  ;;  %v2377_v53 = vsel %vm383_vm0, %v2347_v24, 0  ;;  %v2371_v44 = vsel %vm383_vm0, %v2344_v33, 0  ;;  %v2348_v24 = vld.sshfl [vmem:[#allocation1 + $0x20] sm:$0xff pattern:$0x73625140]  ;;  %v1633_v12 = vadd.f32 %v4394_v21, %v4300_v42 }
 0x1e5   : > { %2485 = vmatpush.bf16.msrb.mxu3 %v2369_v43  ;;  %2446 = vmatpush.bf16.msrb.mxu0 %v2363_v4  ;;  %v1646_v21 = vadd.f32 %v4408_v58, %v4314_v54  ;;  %v1672_v54 = vadd.f32 %v4414_v37, %v4319_v15 }
 0x1e6   : > { %v4430_v8 = vpop.f32.mrf.mxu2 }
 0x1e7   : > { %v1710_v62 = vpop.f32.mrf.mxu3  ;;  %v1673_v25 = vpop.f32.mrf.mxu0  ;;  %v1698_v37 = vadd.f32 %v4430_v8, %v4335_v1  ;;  %v4537_v1 = vld [vmem:[%s4908_s1 + $0x20] sm:$0xf] }
 0x1e8   : > { %v4433_v20 = vadd.f32 %v1710_v62, %v4337_v14  ;;  %v1686_v55 = vpop.f32.mrf.mxu1  ;;  %v2349_v25 = vld.sshfl [vmem:[#allocation1 + $0x28] sm:$0xff pattern:$0x73625140] }
 0x1e9   : > { %v2350_v55 = vld.sshfl [vmem:[#allocation1 + $0x30] sm:$0xff pattern:$0x73625140] }
 0x1ea   : > { %2599 = vst [vmem:[#allocation1 + $0x20] ss:$4 sm:$0xff] %v3928_v23  ;;  %v2383_v23 = vsel %vm383_vm0, %v2350_v55, 0 }
 0x1ee   : > { %v1699_v46 = vpop.f32.mrf.mxu2 }
 0x1ef   : > { %v1712_v51 = vpop.f32.mrf.mxu3  ;;  %v1781_v34 = vpop.f32.mrf.mxu0 }
 0x1f0   : > { %v1980_v14 = vadd.f32 %v1781_v34, %v1516_v35  ;;  %v1794_v52 = vpop.f32.mrf.mxu1 }
 0x1f1   : > { %v1981_v33 = vadd.f32 %v1794_v52, %v4349_v0  ;;  %v2381_v0 = vsel %vm383_vm0, %v2349_v25, 0 }
 0x1f2   : > { %3449 = vmatmul.msk.bf16.vlgmr.msra.gmra.mxu0 %vm379_vm1, %v4441_v50  ;;  %3450 = vmatmul.msk.bf16.vlgmr.msra.gmra.mxu1 %vm379_vm1, %v4441_v50 }
 0x1f3   : > { %3451 = vmatmul.msk.bf16.vlgmr.msra.gmra.mxu2 %vm379_vm1, %v4441_v50  ;;  %1996 = vrot.lane.b32.xlu0 %v1980_v14, %s3672_s10 }
 0x1f4   : > { %3452 = vmatmul.msk.bf16.vlgmr.msra.gmra.mxu3 %vm379_vm1, %v4441_v50  ;;  %2511 = vmatpush.bf16.msra.mxu1 %v2373_v2 }
 0x1f5   : > { %2524 = vmatpush.bf16.msra.mxu2 %v2375_v13  ;;  %2537 = vmatpush.bf16.msra.mxu3 %v2377_v53 }
 0x1f6   : > { %v1807_v61 = vpop.f32.mrf.mxu2  ;;  %2498 = vmatpush.bf16.msra.mxu0 %v2371_v44 }
 0x1f7   : > { %v1982_v43 = vadd.f32 %v1807_v61, %v1542_v5  ;;  %v1820_v4 = vpop.f32.mrf.mxu3  ;;  %v1783_v62 = vpop.f32.mrf.mxu0  ;;  %v2601_v5 = vld.sshfl [vmem:[#allocation1 + $0x8] sm:$0xff pattern:$0x73625140]  ;;  %v2602_v61 = vld.sshfl [vmem:[#allocation1 + $0x10] sm:$0xff pattern:$0x73625140] }
 0x1f8   : > { %v1796_v39 = vpop.f32.mrf.mxu1  ;;  %v1983_v35 = vadd.f32 %v1820_v4, %v4365_v9  ;;  %v2379_v9 = vsel %vm383_vm0, %v2348_v24, 0  ;;  %v2603_v4 = vld.sshfl [vmem:[#allocation1 + $0x18] sm:$0xff pattern:$0x73625140]  ;;  %v2625_v42 = vsel %vm383_vm0, %v2602_v61, 0 }
 0x1f9   : > { %2000 = vrot.lane.b32.xlu1 %v1982_v43, %s3672_s10  ;;  %v2600_v62 = vld.sshfl [vmem:[#allocation1] sm:$0xff pattern:$0x73625140] }
 0x1fa   : > { %2608 = vst [vmem:[#allocation1] ss:$4 sm:$0xff] %v3944_v32  ;;  %v2623_v32 = vsel %vm383_vm0, %v2601_v5, 0 }
 0x1fb   : > { %1998 = vrot.lane.b32.xlu0 %v1981_v33, %s3672_s10 }
 0x1fe   : > { %v1809_v60 = vpop.f32.mrf.mxu2 }
 0x1ff   : > { %v1822_v46 = vpop.f32.mrf.mxu3  ;;  %v1833_v51 = vpop.f32.mrf.mxu0 }
 0x200   : > { %v1846_v34 = vpop.f32.mrf.mxu1  ;;  %v1984_v2 = vadd.f32 %v1833_v51, %v4369_v28  ;;  %v2605_v46 = vld.sshfl [vmem:[#allocation1 + $0x28] sm:$0xff pattern:$0x73625140]  ;;  %v2606_v51 = vld.sshfl [vmem:[#allocation1 + $0x30] sm:$0xff pattern:$0x73625140] }
 0x201   : > { %v1985_v14 = vadd.f32 %v1846_v34, %v1581_v40  ;;  %2002 = vrot.lane.b32.xlu1 %v1983_v35, %s3672_s10  ;;  %v2612_v8 = vld.sshfl [vmem:[#allocation1 + $0x10] sm:$0xff pattern:$0x73625140] }
 0x202   : > { %3453 = vmatmul.msk.bf16.vlgmr.msrb.gmra.mxu0 %vm379_vm1, %v4441_v50  ;;  %3454 = vmatmul.msk.bf16.vlgmr.msrb.gmra.mxu1 %vm379_vm1, %v4441_v50 }
 0x203   : > { %3455 = vmatmul.msk.bf16.vlgmr.msrb.gmra.mxu2 %vm379_vm1, %v4441_v50  ;;  %2006 = vrot.lane.b32.xlu0 %v1985_v14, %s3672_s10  ;;  %v2607_v14 = vld.sshfl [vmem:[#allocation1 + $0x38] sm:$0xff pattern:$0x73625140] }
 0x204   : > { %3456 = vmatmul.msk.bf16.vlgmr.msrb.gmra.mxu3 %vm379_vm1, %v4441_v50  ;;  %2563 = vmatpush.bf16.msrb.mxu1 %v2381_v0  ;;  %v2604_v0 = vld.sshfl [vmem:[#allocation1 + $0x20] sm:$0xff pattern:$0x73625140]  ;;  %v2635_v15 = vsel %vm383_vm0, %v2607_v14, 0 }
 0x205   : > { %2576 = vmatpush.bf16.msrb.mxu2 %v2383_v23  ;;  %2589 = vmatpush.bf16.msrb.mxu3 %v2385_v17  ;;  %2609 = vst [vmem:[#allocation1 + $0x20] ss:$4 sm:$0xff] %v3970_v45  ;;  %v1685_v17 = vadd.f32 %v4416_v63, %v4321_v38  ;;  %v2631_v45 = vsel %vm383_vm0, %v2605_v46, 0  ;;  %v2629_v38 = vsel %vm383_vm0, %v2604_v0, 0 }
 0x206   : > { %v1859_v52 = vpop.f32.mrf.mxu2  ;;  %2550 = vmatpush.bf16.msrb.mxu0 %v2379_v9 }
 0x207   : > { %v1986_v13 = vadd.f32 %v1859_v52, %v1594_v48  ;;  %v1872_v53 = vpop.f32.mrf.mxu3  ;;  %v1835_v44 = vpop.f32.mrf.mxu0 }
 0x208   : > { %v1848_v43 = vpop.f32.mrf.mxu1  ;;  %v1987_v28 = vadd.f32 %v1872_v53, %v4388_v59  ;;  %v2627_v59 = vsel %vm383_vm0, %v2603_v4, 0 }
 0x209   : > { %2008 = vrot.lane.b32.xlu2 %v1986_v13, %s3672_s10  ;;  %2004 = vrot.lane.b32.xlu1 %v1984_v2, %s3672_s10 }
 0x20c   : > { %v2614_v46 = vld.sshfl [vmem:[#allocation1 + $0x20] sm:$0xff pattern:$0x73625140] }
 0x20e   : > { %v1861_v16 = vpop.f32.mrf.mxu2 }
 0x20f   : > { %v1874_v25 = vpop.f32.mrf.mxu3  ;;  %v1885_v55 = vpop.f32.mrf.mxu0 }
 0x210   : > { %v1988_v39 = vadd.f32 %v1885_v55, %v4392_v19  ;;  %v1898_v18 = vpop.f32.mrf.mxu1  ;;  %v2621_v19 = vsel %vm383_vm0, %v2600_v62, 0  ;;  %v2641_v55 = vsel %vm383_vm0, %v2612_v8, 0 }
 0x211   : > { %v1989_v24 = vadd.f32 %v1898_v18, %v1633_v12  ;;  %2010 = vrot.lane.b32.xlu1 %v1987_v28, %s3672_s10  ;;  %v2613_v12 = vld.sshfl [vmem:[#allocation1 + $0x18] sm:$0xff pattern:$0x73625140]  ;;  %v2610_v28 = vld.sshfl [vmem:[#allocation1] sm:$0xff pattern:$0x73625140] }
 0x212   : > { %3457 = vmatmul.msk.bf16.vlgmr.msra.gmra.mxu0 %vm379_vm1, %v4441_v50  ;;  %3458 = vmatmul.msk.bf16.vlgmr.msra.gmra.mxu1 %vm379_vm1, %v4441_v50  ;;  %v2637_v18 = vsel %vm383_vm0, %v2610_v28, 0 }
 0x213   : > { %2014 = vrot.lane.b32.xlu2 %v1989_v24, %s3672_s10  ;;  %3459 = vmatmul.msk.bf16.vlgmr.msra.gmra.mxu2 %vm379_vm1, %v4441_v50 }
 0x214   : > { %3460 = vmatmul.msk.bf16.vlgmr.msra.gmra.mxu3 %vm379_vm1, %v4441_v50  ;;  %2012 = vrot.lane.b32.xlu0 %v1988_v39, %s3672_s10  ;;  %v2643_v39 = vsel %vm383_vm0, %v2613_v12, 0  ;;  %v2028_v12 = vlaneseq }
 0x215   : > { %2673 = vmatpush.bf16.msra.mxu1 %v2623_v32  ;;  %2686 = vmatpush.bf16.msra.mxu2 %v2625_v42 }
 0x216   : > { %v1911_v33 = vpop.f32.mrf.mxu2  ;;  %2699 = vmatpush.bf16.msra.mxu3 %v2627_v59  ;;  %2660 = vmatpush.bf16.msra.mxu0 %v2621_v19  ;;  %v2615_v19 = vld.sshfl [vmem:[#allocation1 + $0x28] sm:$0xff pattern:$0x73625140] }
 0x217   : > { %v1990_v60 = vadd.f32 %v1911_v33, %v1646_v21  ;;  %v1924_v40 = vpop.f32.mrf.mxu3  ;;  %v1887_v35 = vpop.f32.mrf.mxu0  ;;  %v2616_v33 = vld.sshfl [vmem:[#allocation1 + $0x30] sm:$0xff pattern:$0x73625140] }
 0x218   : > { %v1900_v34 = vpop.f32.mrf.mxu1  ;;  %v1991_v23 = vadd.f32 %v1924_v40, %v4411_v29  ;;  %v2633_v29 = vsel %vm383_vm0, %v2606_v51, 0  ;;  %v2617_v35 = vld.sshfl [vmem:[#allocation1 + $0x38] sm:$0xff pattern:$0x73625140]  ;;  %v2649_v14 = vsel %vm383_vm0, %v2616_v33, 0 }
 0x219   : > { %2016 = vrot.lane.b32.xlu1 %v1990_v60, %s3672_s10  ;;  %v2647_v34 = vsel %vm383_vm0, %v2615_v19, 0  ;;  %v2651_v0 = vsel %vm383_vm0, %v2617_v35, 0 }
 0x21c   : > { %2018 = vrot.lane.b32.xlu0 %v1991_v23, %s3672_s10  ;;  %v2645_v23 = vsel %vm383_vm0, %v2614_v46, 0 }
 0x21e   : > { %v1913_v58 = vpop.f32.mrf.mxu2 }
 0x21f   : > { %v1926_v9 = vpop.f32.mrf.mxu3  ;;  %v1937_v48 = vpop.f32.mrf.mxu0 }
 0x220   : > { %v1992_v52 = vadd.f32 %v1937_v48, %v1672_v54  ;;  %v1950_v2 = vpop.f32.mrf.mxu1 }
 0x221   : > { %v1993_v13 = vadd.f32 %v1950_v2, %v1685_v17 }
 0x222   : > { %3461 = vmatmul.msk.bf16.vlgmr.msrb.gmra.mxu0 %vm379_vm1, %v4441_v50  ;;  %3462 = vmatmul.msk.bf16.vlgmr.msrb.gmra.mxu1 %vm379_vm1, %v4441_v50 }
 0x223   : > { %3463 = vmatmul.msk.bf16.vlgmr.msrb.gmra.mxu2 %vm379_vm1, %v4441_v50  ;;  %2020 = vrot.lane.b32.xlu2 %v1992_v52, %s3672_s10 }
 0x224   : > { %3464 = vmatmul.msk.bf16.vlgmr.msrb.gmra.mxu3 %vm379_vm1, %v4441_v50  ;;  %2022 = vrot.lane.b32.xlu1 %v1993_v13, %s3672_s10  ;;  %v2611_v50 = vld.sshfl [vmem:[#allocation1 + $0x8] sm:$0xff pattern:$0x73625140] }
 0x225   : > { %2725 = vmatpush.bf16.msrb.mxu1 %v2631_v45  ;;  %2738 = vmatpush.bf16.msrb.mxu2 %v2633_v29 }
 0x226   : > { %v1963_v63 = vpop.f32.mrf.mxu2  ;;  %2751 = vmatpush.bf16.msrb.mxu3 %v2635_v15  ;;  %2712 = vmatpush.bf16.msrb.mxu0 %v2629_v38 }
 0x227   : > { %v1994_v53 = vadd.f32 %v1963_v63, %v1698_v37  ;;  %v1976_v44 = vpop.f32.mrf.mxu3  ;;  %v1939_v5 = vpop.f32.mrf.mxu0 }
 0x228   : > { %v4531_v61 = vadd.f32 %v1976_v44, %v4433_v20  ;;  %v1952_v43 = vpop.f32.mrf.mxu1  ;;  %v2639_v20 = vsel %vm383_vm0, %v2611_v50, 0 }
 0x229   : > { %2024 = vrot.lane.b32.xlu0 %v1994_v53, %s3672_s10 }
 0x22e   : > { %v1965_v4 = vpop.f32.mrf.mxu2 }
 0x22f   : > { %v1978_v62 = vpop.f32.mrf.mxu3  ;;  %v4539_v16 = vpop.f32.mrf.mxu0 }
 0x230   : > { %v4541_v25 = vpop.f32.mrf.mxu1 }
 0x232   : > { %3466 = vmatmul.msk.bf16.vlgmr.msra.gmra.mxu0 %vm379_vm1, %v4537_v1  ;;  %3467 = vmatmul.msk.bf16.vlgmr.msra.gmra.mxu1 %vm379_vm1, %v4537_v1 }
 0x233   : > { %3468 = vmatmul.msk.bf16.vlgmr.msra.gmra.mxu2 %vm379_vm1, %v4537_v1  ;;  %2777 = vmatpush.bf16.msra.mxu1 %v2639_v20 }
 0x234   : > { %3469 = vmatmul.msk.bf16.vlgmr.msra.gmra.mxu3 %vm379_vm1, %v4537_v1  ;;  %2790 = vmatpush.bf16.msra.mxu2 %v2641_v55 }
 0x235   : > { %2803 = vmatpush.bf16.msra.mxu3 %v2643_v39  ;;  %2764 = vmatpush.bf16.msra.mxu0 %v2637_v18 }
 0x236   : > { %v4555_v24 = vpop.f32.mrf.mxu2 }
 0x237   : > { %v4557_v32 = vpop.f32.mrf.mxu3  ;;  %v2134_v42 = vpop.f32.mrf.mxu0 }
 0x238   : > { %v2147_v59 = vpop.f32.mrf.mxu1  ;;  %v4617_v42 = vand.u32 127, %v2028_v12 }
 0x23a   : > { %vm2030_vm2 = vcmp.lt.s32.totalorder %v4617_v42, 127  ;;  %vm2909_vm3 = vcmp.lt.s32.totalorder %v4617_v42, 126 }
 0x23e   : > { %v2160_v21 = vpop.f32.mrf.mxu2 }
 0x23f   : > { %v2173_v60 = vpop.f32.mrf.mxu3  ;;  %v4559_v40 = vpop.f32.mrf.mxu0 }
 0x240   : > { %v4561_v51 = vpop.f32.mrf.mxu1 }
 0x242   : > { %3470 = vmatmul.msk.bf16.vlgmr.msrb.gmra.mxu0 %vm379_vm1, %v4537_v1  ;;  %3471 = vmatmul.msk.bf16.vlgmr.msrb.gmra.mxu1 %vm379_vm1, %v4537_v1 }
 0x243   : > { %3472 = vmatmul.msk.bf16.vlgmr.msrb.gmra.mxu2 %vm379_vm1, %v4537_v1  ;;  %2829 = vmatpush.bf16.msrb.mxu1 %v2647_v34 }
 0x244   : > { %3473 = vmatmul.msk.bf16.vlgmr.msrb.gmra.mxu3 %vm379_vm1, %v4537_v1  ;;  %2842 = vmatpush.bf16.msrb.mxu2 %v2649_v14 }
 0x245   : > { %2855 = vmatpush.bf16.msrb.mxu3 %v2651_v0  ;;  %2816 = vmatpush.bf16.msrb.mxu0 %v2645_v23 }
 0x246   : > { %v4575_v54 = vpop.f32.mrf.mxu2 }
 0x247   : > { %v4577_v58 = vpop.f32.mrf.mxu3  ;;  %v2186_v17 = vpop.f32.mrf.mxu0 }
 0x248   : > { %v2199_v9 = vpop.f32.mrf.mxu1 }
 0x24e   : > { %v2212_v48 = vpop.f32.mrf.mxu2 }
 0x24f   : > { %v2225_v52 = vpop.f32.mrf.mxu3  ;;  %v4579_v2 = vpop.f32.mrf.mxu0 }
 0x250   : > { %v4581_v13 = vpop.f32.mrf.mxu1 }
 0x252   : > { %3474 = vmatmul.msk.bf16.vlgmr.msra.gmra.mxu0 %vm379_vm1, %v4537_v1  ;;  %3475 = vmatmul.msk.bf16.vlgmr.msra.gmra.mxu1 %vm379_vm1, %v4537_v1 }
 0x253   : > { %3476 = vmatmul.msk.bf16.vlgmr.msra.gmra.mxu2 %vm379_vm1, %v4537_v1 }
 0x254   : > { %3477 = vmatmul.msk.bf16.vlgmr.msra.gmra.mxu3 %vm379_vm1, %v4537_v1 }
 0x256   : > { %v4591_v45 = vpop.f32.mrf.mxu2 }
 0x257   : > { %v4593_v29 = vpop.f32.mrf.mxu3  ;;  %v2238_v15 = vpop.f32.mrf.mxu0 }
 0x258   : > { %v2251_v38 = vpop.f32.mrf.mxu1 }
 0x25e   : > { %v2264_v37 = vpop.f32.mrf.mxu2 }
 0x25f   : > { %v2277_v63 = vpop.f32.mrf.mxu3  ;;  %v4595_v53 = vpop.f32.mrf.mxu0 }
 0x260   : > { %v4597_v44 = vpop.f32.mrf.mxu1 }
 0x262   : > { %3478 = vmatmul.msk.bf16.vlgmr.msrb.gmra.mxu0 %vm379_vm1, %v4537_v1  ;;  %3479 = vmatmul.msk.bf16.vlgmr.msrb.gmra.mxu1 %vm379_vm1, %v4537_v1 }
 0x263   : > { %3480 = vmatmul.msk.bf16.vlgmr.msrb.gmra.mxu2 %vm379_vm1, %v4537_v1  ;;  %v2009_v19 = vpop.permute.xlu2 %2008 }
 0x264   : > { %3481 = vmatmul.msk.bf16.vlgmr.msrb.gmra.mxu3 %vm379_vm1, %v4537_v1 }
 0x265   : > { %v4607_v5 = vpop.permute.xlu0 %1996 }
 0x266   : > { %v4609_v43 = vpop.f32.mrf.mxu2 }
 0x267   : > { %v4611_v50 = vpop.f32.mrf.mxu3  ;;  %v2290_v4 = vpop.f32.mrf.mxu0 }
 0x268   : > { %v2303_v8 = vpop.f32.mrf.mxu1 }
 0x26b   : > { %v4613_v62 = vpop.permute.xlu1 %2000 }
 0x26d   : > { %v4615_v28 = vpop.permute.xlu0 %1998  ;;  %v2015_v38 = vpop.permute.xlu2 %2014 }
 0x26e   : > { %v2316_v20 = vpop.f32.mrf.mxu2 }
 0x26f   : > { %v2329_v55 = vpop.f32.mrf.mxu3  ;;  %v2396_v39 = vpop.f32.mrf.mxu0 }
 0x270   : > { %v2409_v18 = vpop.f32.mrf.mxu1 }
 0x271   : > { %v2410_v1 = vadd.f32 %v2409_v18, %v4541_v25 }
 0x273   : > { %v4620_v59 = vpop.permute.xlu1 %2002 }
 0x275   : > { %v4623_v21 = vpop.permute.xlu0 %2006 }
 0x276   : > { %v2040_v33 = vsel %vm2030_vm2, %v4623_v21, %v2009_v19  ;;  %v2422_v60 = vpop.f32.mrf.mxu2 }
 0x277   : > { %v4629_v35 = vadd.f32 %v2040_v33, %v4181_v47  ;;  %v2435_v46 = vpop.f32.mrf.mxu3  ;;  %v2398_v34 = vpop.f32.mrf.mxu0 }
 0x278   : > { %v2436_v14 = vadd.f32 %v2435_v46, %v4557_v32  ;;  %v2411_v25 = vpop.f32.mrf.mxu1 }
 0x27b   : > { %v4632_v0 = vpop.permute.xlu1 %2004 }
 0x27e   : > { %v2424_v23 = vpop.f32.mrf.mxu2 }
 0x27f   : > { %v2437_v17 = vpop.f32.mrf.mxu3  ;;  %v2448_v9 = vpop.f32.mrf.mxu0 }
 0x280   : > { %v2461_v48 = vpop.f32.mrf.mxu1 }
 0x283   : > { %v4634_v52 = vpop.permute.xlu1 %2010 }
 0x284   : > { %v2039_v15 = vsel %vm2030_vm2, %v2009_v19, %v4634_v52 }
 0x285   : > { %v4640_v47 = vadd.f32 %v2039_v15, %v4195_v31 }
 0x286   : > { %v4642_v37 = vpop.permute.xlu0 %2012  ;;  %v2474_v32 = vpop.f32.mrf.mxu2 }
 0x287   : > { %v2037_v63 = vsel %vm2030_vm2, %v4642_v37, %v2015_v38  ;;  %v2487_v4 = vpop.f32.mrf.mxu3  ;;  %v2450_v8 = vpop.f32.mrf.mxu0 }
 0x288   : > { %v4648_v12 = vadd.f32 %v2037_v63, %v4202_v56  ;;  %v2463_v20 = vpop.f32.mrf.mxu1 }
 0x28b   : > { %v4650_v55 = vpop.permute.xlu1 %2016 }
 0x28c   : > { %4926 = vst [vmem:[#allocation16_spill] sm:$0xff] %v4650_v55  ;;  %v2036_v31 = vsel %vm2030_vm2, %v2015_v38, %v4650_v55 }
 0x28d   : > { %v4656_v18 = vadd.f32 %v2036_v31, %v4206_v49 }
 0x28e   : > { %v2476_v19 = vpop.f32.mrf.mxu2 }
 0x28f   : > { %4927 = vst [vmem:[#allocation17_spill] sm:$0xff] %v4656_v18  ;;  %v2489_v33 = vpop.f32.mrf.mxu3  ;;  %v2500_v46 = vpop.f32.mrf.mxu0  ;;  %v2397_v19 = vadd.f32 %v2396_v39, %v4539_v16 }
 0x290   : > { %v2513_v34 = vpop.f32.mrf.mxu1 }
 0x296   : > { %v2526_v25 = vpop.f32.mrf.mxu2 }
 0x297   : > { %v2539_v23 = vpop.f32.mrf.mxu3  ;;  %v2502_v17 = vpop.f32.mrf.mxu0 }
 0x298   : > { %v2515_v15 = vpop.f32.mrf.mxu1 }
 0x299   : > { %v2423_v15 = vadd.f32 %v2422_v60, %v4555_v24 }
 0x29e   : > { %v2528_v56 = vpop.f32.mrf.mxu2 }
 0x29f   : > { %v2541_v63 = vpop.f32.mrf.mxu3  ;;  %v4658_v8 = vpop.f32.mrf.mxu0 }
 0x2a0   : > { %v4660_v20 = vpop.f32.mrf.mxu1 }
 0x2a6   : > { %v4662_v36 = vpop.f32.mrf.mxu2 }
 0x2a7   : > { %v4664_v38 = vpop.f32.mrf.mxu3  ;;  %v2554_v49 = vpop.f32.mrf.mxu0 }
 0x2a8   : > { %v2567_v31 = vpop.f32.mrf.mxu1 }
 0x2ae   : > { %v2580_v33 = vpop.f32.mrf.mxu2 }
 0x2af   : > { %v2593_v30 = vpop.f32.mrf.mxu3  ;;  %v2662_v22 = vpop.f32.mrf.mxu0 }
 0x2b0   : > { %v2861_v26 = vadd.f32 %v2662_v22, %v2397_v19  ;;  %v2675_v17 = vpop.f32.mrf.mxu1  ;;  %v2449_v30 = vadd.f32 %v2448_v9, %v4559_v40  ;;  %v2462_v22 = vadd.f32 %v2461_v48, %v4561_v51  ;;  %v2514_v19 = vadd.f32 %v2513_v34, %v4581_v13 }
 0x2b1   : > { %v2862_v6 = vadd.f32 %v2675_v17, %v2410_v1  ;;  %v2553_v13 = vadd.f32 %v4658_v8, %v4595_v53  ;;  %v2592_v53 = vadd.f32 %v4664_v38, %v4611_v50  ;;  %v2045_v50 = vsel %vm2030_vm2, %v4607_v5, %v4615_v28 }
 0x2b2   : > { %2877 = vrot.lane.b32.xlu2 %v2861_v26, %s3673_s13  ;;  %v2047_v38 = vadd.f32 %v2045_v50, %v4152_v57  ;;  %v2044_v57 = vsel %vm2030_vm2, %v4615_v28, %v4613_v62  ;;  %v4741_v28 = vpop.permute.xlu1 %2022 }
 0x2b6   : > { %v2688_v56 = vpop.f32.mrf.mxu2 }
 0x2b7   : > { %v2863_v63 = vadd.f32 %v2688_v56, %v2423_v15  ;;  %v2701_v18 = vpop.f32.mrf.mxu3  ;;  %v2664_v10 = vpop.f32.mrf.mxu0  ;;  %v2540_v15 = vadd.f32 %v2539_v23, %v4593_v29 }
 0x2b8   : > { %v2677_v55 = vpop.f32.mrf.mxu1  ;;  %v2864_v26 = vadd.f32 %v2701_v18, %v2436_v14  ;;  %v2475_v10 = vadd.f32 %v2474_v32, %v4575_v54  ;;  %v2501_v14 = vadd.f32 %v2500_v46, %v4579_v2 }
 0x2b9   : > { %2881 = vrot.lane.b32.xlu0 %v2863_v63, %s3673_s13 }
 0x2ba   : > { %2879 = vrot.lane.b32.xlu2 %v2862_v6, %s3673_s13  ;;  %v2488_v6 = vadd.f32 %v2487_v4, %v4577_v58  ;;  %v2527_v4 = vadd.f32 %v2526_v25, %v4591_v45 }
 0x2be   : > { %v2690_v16 = vpop.f32.mrf.mxu2 }
 0x2bf   : > { %v2703_v39 = vpop.f32.mrf.mxu3  ;;  %v2714_v49 = vpop.f32.mrf.mxu0 }
 0x2c0   : > { %v2865_v31 = vadd.f32 %v2714_v49, %v2449_v30  ;;  %v2727_v24 = vpop.f32.mrf.mxu1  ;;  %v2579_v49 = vadd.f32 %v4662_v36, %v4609_v43  ;;  %v4702_v36 = vpop.permute.xlu2 %2020 }
 0x2c1   : > { %v2866_v60 = vadd.f32 %v2727_v24, %v2462_v22  ;;  %v2566_v22 = vadd.f32 %v4660_v20, %v4597_v44 }
 0x2c2   : > { %2883 = vrot.lane.b32.xlu2 %v2864_v26, %s3673_s13  ;;  %2885 = vrot.lane.b32.xlu1 %v2865_v31, %s3673_s13 }
 0x2c3   : > { %2887 = vrot.lane.b32.xlu0 %v2866_v60, %s3673_s13 }
 0x2c6   : > { %v2740_v40 = vpop.f32.mrf.mxu2 }
 0x2c7   : > { %v2753_v1 = vpop.f32.mrf.mxu3  ;;  %v2716_v9 = vpop.f32.mrf.mxu0  ;;  %v2867_v51 = vadd.f32 %v2740_v40, %v2475_v10 }
 0x2c8   : > { %v2868_v48 = vadd.f32 %v2753_v1, %v2488_v6  ;;  %v2729_v55 = vpop.f32.mrf.mxu1  ;;  %v4719_v1 = vpop.permute.xlu0 %2018 }
 0x2ca   : > { %2889 = vrot.lane.b32.xlu2 %v2867_v51, %s3673_s13  ;;  %2891 = vrot.lane.b32.xlu1 %v2868_v48, %s3673_s13  ;;  %v4726_v51 = vld [vmem:[%s4909_s2] sm:$0xff]  ;;  %v2043_v48 = vsel %vm2030_vm2, %v4613_v62, %v4620_v59 }
 0x2cb   : > { %v2953_v55 = vperm.slane %v4726_v51, 0 }
 0x2ce   : > { %v2742_v18 = vpop.f32.mrf.mxu2 }
 0x2cf   : > { %v2755_v33 = vpop.f32.mrf.mxu3  ;;  %v2766_v17 = vpop.f32.mrf.mxu0  ;;  %v2049_v18 = vadd.f32 %v2043_v48, %v4170_v7  ;;  %v2042_v7 = vsel %vm2030_vm2, %v4620_v59, %v4632_v0 }
 0x2d0   : > { %v2869_v54 = vadd.f32 %v2766_v17, %v2501_v14  ;;  %v2779_v32 = vpop.f32.mrf.mxu1  ;;  %v4721_v9 = vpop.permute.xlu0 %2024  ;;  %v2048_v14 = vadd.f32 %v2044_v57, %v4156_v3  ;;  %v2954_v33 = vperm.slane %v4726_v51, 1  ;;  %v2955_v17 = vperm.slane %v4726_v51, 2 }
 0x2d1   : > { %v2870_v58 = vadd.f32 %v2779_v32, %v2514_v19 }
 0x2d2   : > { %2893 = vrot.lane.b32.xlu0 %v2869_v54, %s3673_s13 }
 0x2d3   : > { %2895 = vrot.lane.b32.xlu2 %v2870_v58, %s3673_s13 }
 0x2d6   : > { %v2792_v56 = vpop.f32.mrf.mxu2 }
 0x2d7   : > { %v2871_v63 = vadd.f32 %v2792_v56, %v2527_v4  ;;  %v2805_v30 = vpop.f32.mrf.mxu3  ;;  %v2768_v2 = vpop.f32.mrf.mxu0 }
 0x2d8   : > { %v2872_v46 = vadd.f32 %v2805_v30, %v2540_v15  ;;  %v2781_v16 = vpop.f32.mrf.mxu1 }
 0x2d9   : > { %2897 = vrot.lane.b32.xlu1 %v2871_v63, %s3673_s13 }
 0x2da   : > { %2899 = vrot.lane.b32.xlu0 %v2872_v46, %s3673_s13  ;;  %v2041_v46 = vsel %vm2030_vm2, %v4632_v0, %v4623_v21  ;;  %v2957_v21 = vperm.slane %v4726_v51, 4 }
 0x2db   : > { %v2051_v59 = vadd.f32 %v2041_v46, %v4177_v27 }
 0x2de   : > { %v2794_v34 = vpop.f32.mrf.mxu2 }
 0x2df   : > { %v2807_v45 = vpop.f32.mrf.mxu3  ;;  %v2818_v25 = vpop.f32.mrf.mxu0 }
 0x2e0   : > { %v2873_v29 = vadd.f32 %v2818_v25, %v2553_v13  ;;  %v2831_v23 = vpop.f32.mrf.mxu1  ;;  %v2956_v45 = vperm.slane %v4726_v51, 3 }
 0x2e1   : > { %v2874_v39 = vadd.f32 %v2831_v23, %v2566_v22  ;;  %v2050_v22 = vadd.f32 %v2042_v7, %v4173_v11  ;;  %v4928_v7 = vld [vmem:[#allocation16_spill] sm:$0xff] }
 0x2e2   : > { %2901 = vrot.lane.b32.xlu2 %v2873_v29, %s3673_s13 }
 0x2e3   : > { %2903 = vrot.lane.b32.xlu1 %v2874_v39, %s3673_s13 }
 0x2e6   : > { %v2844_v26 = vpop.f32.mrf.mxu2 }
 0x2e7   : > { %v2875_v8 = vadd.f32 %v2844_v26, %v2579_v49  ;;  %v2857_v31 = vpop.f32.mrf.mxu3  ;;  %v2820_v44 = vpop.f32.mrf.mxu0  ;;  %v2958_v26 = vperm.slane %v4726_v51, 5 }
 0x2e8   : > { %v2833_v20 = vpop.f32.mrf.mxu1  ;;  %v2876_v24 = vadd.f32 %v2857_v31, %v2592_v53 }
 0x2e9   : > { %2905 = vrot.lane.b32.xlu0 %v2875_v8, %s3673_s13 }
 0x2ea   : > { %2026 = vrot.lane.b32.xlu2 %v4531_v61, %s3672_s10  ;;  %s3129_s10 = sshll.u32 %s4716_s15, 4  ;;  %s3130_s10 = int_to_ptr.vmem [resolvable:$true] %s3129_s10 }
 0x2eb   : > { %2907 = vrot.lane.b32.xlu1 %v2876_v24, %s3673_s13  ;;  %s3602_s13 = sshra.s32 %s3132_s11, 4  ;;  %s3603_s13 = int_to_ptr.hbm [resolvable:$true] %s3602_s13 }
 0x2ec   : > { %s3604_s14 = scalar_lea.hbm %s3603_s13, 128  ;;  %p3609_p7 = scmp.lt.s32.totalorder %s3603_s13, %s4910_s3 }
 0x2ed   : > { %p3605_p4 = scmp.ne.s32.totalorder %s3603_s13, %s3604_s14  ;;  %p3610_p8 = scmp.lt.s32.totalorder %s3608_s24, %s3604_s14 }
 0x2ee   : > { %v2846_v60 = vpop.f32.mrf.mxu2 }
 0x2ef   : > { %v2859_v10 = vpop.f32.mrf.mxu3  ;;  %p3606_p5 = pnand %p3605_p4, %p3756_p9  ;;  %p3611_p10 = por %p3610_p8, %p3609_p7 }
 0x2f1   : > { %p3607_p6 = pneg %p3606_p5 }
 0x2f3   : > { %p3612_p13 = pnand %p3611_p10, %p3607_p6 }
 0x30c   : > { %v4704_v43 = vpop.permute.xlu2 %2877 }
 0x314   : > { %v2880_v6 = vpop.permute.xlu2 %2879 }
 0x315   : > { %v2924_v61 = vsel %vm2909_vm3, %v4704_v43, %v2880_v6 }
 0x316   : > { %v2926_v40 = vadd.f32 %v2924_v61, %v2047_v38 }
 0x318   : > { %3058 = vst [vmem:[%s4716_s15] sm:$0xff] %v2926_v40  ;;  %v2985_v58 = vmul.f32 %v2953_v55, %v2926_v40 }
 0x31a   : > { %v3023_v63 = vmul.f32 %v2985_v58, %v2926_v40 }
 0x31c   : > { %v2884_v19 = vpop.permute.xlu2 %2883 }
 0x324   : > { %v2890_v29 = vpop.permute.xlu2 %2889 }
 0x32b   : > { %v2882_v54 = vpop.permute.xlu0 %2881 }
 0x32c   : > { %v2922_v32 = vsel %vm2909_vm3, %v2882_v54, %v2884_v19  ;;  %v2923_v62 = vsel %vm2909_vm3, %v2880_v6, %v2882_v54  ;;  %v2959_v6 = vperm.slane %v4726_v51, 6 }
 0x32d   : > { %v2927_v4 = vadd.f32 %v2923_v62, %v2048_v14  ;;  %v2928_v15 = vadd.f32 %v2922_v32, %v2049_v18 }
 0x32f   : > { %v2986_v3 = vmul.f32 %v2954_v33, %v2927_v4  ;;  %v2987_v56 = vmul.f32 %v2955_v17, %v2928_v15  ;;  %3059 = vst [vmem:[%s4716_s15 + $0x8] sm:$0xff] %v2927_v4  ;;  %v4784_v33 = vld [vmem:[%s4909_s2 + $0x8] sm:$0xff] }
 0x330   : > { %3060 = vst [vmem:[%s4716_s15 + $0x10] sm:$0xff] %v2928_v15 }
 0x331   : > { %v3002_v30 = vadd.f32 %v2986_v3, %v2985_v58  ;;  %v3024_v2 = vmul.f32 %v2986_v3, %v2927_v4  ;;  %v3025_v13 = vmul.f32 %v2987_v56, %v2928_v15  ;;  %v2960_v58 = vperm.slane %v4726_v51, 7 }
 0x332   : > { %v2961_v4 = vperm.slane %v4784_v33, 0  ;;  %v2035_v51 = vsel %vm2030_vm2, %v4928_v7, %v4719_v1  ;;  %v2967_v7 = vperm.slane %v4784_v33, 6 }
 0x333   : > { %v3003_v16 = vadd.f32 %v3002_v30, %v2987_v56  ;;  %v3039_v34 = vadd.f32 %v3024_v2, %v3023_v63 }
 0x334   : > { %v2886_v25 = vpop.permute.xlu1 %2885 }
 0x335   : > { %v3040_v23 = vadd.f32 %v3039_v34, %v3025_v13  ;;  %v2921_v39 = vsel %vm2909_vm3, %v2884_v19, %v2886_v25  ;;  %v2888_v0 = vpop.permute.xlu0 %2887  ;;  %v2038_v19 = vsel %vm2030_vm2, %v4634_v52, %v4642_v37  ;;  %v4930_v34 = vld [vmem:[#allocation11_spill] sm:$0xff] }
 0x336   : > { %v2929_v49 = vadd.f32 %v2921_v39, %v2050_v22  ;;  %v2919_v11 = vsel %vm2909_vm3, %v2888_v0, %v2890_v29  ;;  %v2920_v53 = vsel %vm2909_vm3, %v2886_v25, %v2888_v0  ;;  %v2054_v32 = vadd.f32 %v2038_v19, %v4198_v41 }
 0x337   : > { %v2930_v8 = vadd.f32 %v2920_v53, %v2051_v59  ;;  %v2931_v27 = vadd.f32 %v2919_v11, %v4629_v35  ;;  %v2034_v41 = vsel %vm2030_vm2, %v4719_v1, %v4702_v36  ;;  %v2963_v59 = vperm.slane %v4784_v33, 2 }
 0x338   : > { %v2988_v31 = vmul.f32 %v2956_v45, %v2929_v49  ;;  %3061 = vst [vmem:[%s4716_s15 + $0x18] sm:$0xff] %v2929_v49  ;;  %v2058_v22 = vadd.f32 %v2034_v41, %v4930_v34  ;;  %v2962_v45 = vperm.slane %v4784_v33, 1  ;;  %v2964_v11 = vperm.slane %v4784_v33, 3 }
 0x339   : > { %v2989_v44 = vmul.f32 %v2957_v21, %v2930_v8  ;;  %3062 = vst [vmem:[%s4716_s15 + $0x20] sm:$0xff] %v2930_v8  ;;  %v2990_v60 = vmul.f32 %v2958_v26, %v2931_v27 }
 0x33a   : > { %v3004_v20 = vadd.f32 %v3003_v16, %v2988_v31  ;;  %v3026_v24 = vmul.f32 %v2988_v31, %v2929_v49  ;;  %3063 = vst [vmem:[%s4716_s15 + $0x28] sm:$0xff] %v2931_v27  ;;  %v3674_v16 = vmov 0.0   ;;  %v4931_v49 = vld [vmem:[#allocation17_spill] sm:$0xff] }
 0x33b   : > { %v3027_v38 = vmul.f32 %v2989_v44, %v2930_v8  ;;  %v3028_v35 = vmul.f32 %v2990_v60, %v2931_v27  ;;  %2947 = vst.msk [vmem:[#allocation2] sm:$0xff] %vm2946_vm4, %v3674_v16 }
 0x33c   : > { %v3041_v10 = vadd.f32 %v3040_v23, %v3026_v24  ;;  %v3005_v50 = vadd.f32 %v3004_v20, %v2989_v44  ;;  %v2892_v61 = vpop.permute.xlu1 %2891  ;;  %2948 = vst.msk [vmem:[#allocation3] sm:$0xff] %vm2946_vm4, %v3674_v16 }
 0x33d   : > { %v2918_v40 = vsel %vm2909_vm3, %v2890_v29, %v2892_v61 }
 0x33e   : > { %v3006_v57 = vadd.f32 %v3005_v50, %v2990_v60  ;;  %v3042_v48 = vadd.f32 %v3041_v10, %v3027_v38  ;;  %v2932_v55 = vadd.f32 %v2918_v40, %v4640_v47  ;;  %v2896_v47 = vpop.permute.xlu2 %2895  ;;  %v2033_v60 = vsel %vm2030_vm2, %v4702_v36, %v4741_v28 }
 0x340   : > { %v3043_v14 = vadd.f32 %v3042_v48, %v3028_v35  ;;  %v2991_v18 = vmul.f32 %v2959_v6, %v2932_v55  ;;  %3064 = vst [vmem:[%s4716_s15 + $0x30] sm:$0xff] %v2932_v55 }
 0x342   : > { %v3007_v17 = vadd.f32 %v3006_v57, %v2991_v18  ;;  %v3029_v54 = vmul.f32 %v2991_v18, %v2932_v55  ;;  %v4932_v57 = vld [vmem:[#allocation12_spill] sm:$0xff]  ;;  %v2965_v18 = vperm.slane %v4784_v33, 4 }
 0x343   : > { %v2059_v35 = vadd.f32 %v2033_v60, %v4932_v57 }
 0x344   : > { %v3044_v62 = vadd.f32 %v3043_v14, %v3029_v54  ;;  %v2894_v15 = vpop.permute.xlu0 %2893 }
 0x345   : > { %v2916_v52 = vsel %vm2909_vm3, %v2894_v15, %v2896_v47  ;;  %v2917_v37 = vsel %vm2909_vm3, %v2892_v61, %v2894_v15  ;;  %v4933_v15 = vld [vmem:[#allocation13_spill] sm:$0xff] }
 0x346   : > { %v2933_v3 = vadd.f32 %v2917_v37, %v2054_v32  ;;  %v2934_v56 = vadd.f32 %v2916_v52, %v4648_v12  ;;  %v4929_v12 = vld [vmem:[#allocation10_spill] sm:$0xff]  ;;  %v2902_v1 = vpop.permute.xlu2 %2901 }
 0x347   : > { %v2057_v13 = vadd.f32 %v2035_v51, %v4929_v12  ;;  %v4934_v51 = vld [vmem:[#allocation14_spill] sm:$0xff] }
 0x348   : > { %v2992_v63 = vmul.f32 %v2960_v58, %v2933_v3  ;;  %v2993_v30 = vmul.f32 %v2961_v4, %v2934_v56  ;;  %3065 = vst [vmem:[%s4716_s15 + $0x38] sm:$0xff] %v2933_v3 }
 0x349   : > { %3066 = vst [vmem:[%s4716_s15 + $0x40] sm:$0xff] %v2934_v56 }
 0x34a   : > { %v3008_v2 = vadd.f32 %v3007_v17, %v2992_v63  ;;  %v3030_v46 = vmul.f32 %v2992_v63, %v2933_v3  ;;  %v3031_v23 = vmul.f32 %v2993_v30, %v2934_v56  ;;  %v2966_v3 = vperm.slane %v4784_v33, 5 }
 0x34b   : > { %v2898_v25 = vpop.permute.xlu1 %2897 }
 0x34c   : > { %v3009_v29 = vadd.f32 %v3008_v2, %v2993_v30  ;;  %v3045_v39 = vadd.f32 %v3044_v62, %v3030_v46  ;;  %v2915_v21 = vsel %vm2909_vm3, %v2896_v47, %v2898_v25  ;;  %v2900_v0 = vpop.permute.xlu0 %2899  ;;  %v2032_v47 = vsel %vm2030_vm2, %v4741_v28, %v4721_v9  ;;  %v4935_v30 = vld [vmem:[#allocation15_spill] sm:$0xff] }
 0x34d   : > { %v2935_v26 = vadd.f32 %v2915_v21, %v4931_v49  ;;  %v2913_v53 = vsel %vm2909_vm3, %v2900_v0, %v2902_v1  ;;  %v2914_v8 = vsel %vm2909_vm3, %v2898_v25, %v2900_v0  ;;  %v2060_v52 = vadd.f32 %v2032_v47, %v4933_v15 }
 0x34e   : > { %v3046_v27 = vadd.f32 %v3045_v39, %v3031_v23  ;;  %v2936_v31 = vadd.f32 %v2914_v8, %v2057_v13  ;;  %v2937_v44 = vadd.f32 %v2913_v53, %v2058_v22  ;;  %v2027_v36 = vpop.permute.xlu2 %2026 }
 0x34f   : > { %v2994_v20 = vmul.f32 %v2962_v45, %v2935_v26  ;;  %3067 = vst [vmem:[%s4716_s15 + $0x48] sm:$0xff] %v2935_v26  ;;  %v2031_v58 = vsel %vm2030_vm2, %v4721_v9, %v2027_v36  ;;  %v2046_v4 = vsel %vm2030_vm2, %v2027_v36, %v4607_v5  ;;  %v2968_v9 = vperm.slane %v4784_v33, 7 }
 0x350   : > { %v2995_v24 = vmul.f32 %v2963_v59, %v2936_v31  ;;  %3068 = vst [vmem:[%s4716_s15 + $0x50] sm:$0xff] %v2936_v31  ;;  %v2996_v38 = vmul.f32 %v2964_v11, %v2937_v44  ;;  %v2061_v63 = vadd.f32 %v2031_v58, %v4934_v51  ;;  %v2062_v5 = vadd.f32 %v2046_v4, %v4935_v30 }
 0x351   : > { %v3010_v10 = vadd.f32 %v3009_v29, %v2994_v20  ;;  %v3032_v50 = vmul.f32 %v2994_v20, %v2935_v26  ;;  %3069 = vst [vmem:[%s4716_s15 + $0x58] sm:$0xff] %v2937_v44 }
 0x352   : > { %v3033_v6 = vmul.f32 %v2995_v24, %v2936_v31  ;;  %v3034_v55 = vmul.f32 %v2996_v38, %v2937_v44 }
 0x353   : > { %v3047_v61 = vadd.f32 %v3046_v27, %v3032_v50  ;;  %v3011_v40 = vadd.f32 %v3010_v10, %v2995_v24 }
 0x355   : > { %v3012_v48 = vadd.f32 %v3011_v40, %v2996_v38  ;;  %v3048_v14 = vadd.f32 %v3047_v61, %v3033_v6  ;;  %v2904_v19 = vpop.permute.xlu1 %2903 }
 0x356   : > { %v2912_v17 = vsel %vm2909_vm3, %v2902_v1, %v2904_v19 }
 0x357   : > { %v3049_v54 = vadd.f32 %v3048_v14, %v3034_v55  ;;  %v2938_v32 = vadd.f32 %v2912_v17, %v2059_v35 }
 0x359   : > { %v2997_v62 = vmul.f32 %v2965_v18, %v2938_v32  ;;  %3070 = vst [vmem:[%s4716_s15 + $0x60] sm:$0xff] %v2938_v32 }
 0x35b   : > { %v3035_v37 = vmul.f32 %v2997_v62, %v2938_v32  ;;  %v2906_v56 = vpop.permute.xlu0 %2905  ;;  %v3013_v41 = vadd.f32 %v3012_v48, %v2997_v62 }
 0x35c   : > { %v2911_v28 = vsel %vm2909_vm3, %v2904_v19, %v2906_v56 }
 0x35d   : > { %v2939_v2 = vadd.f32 %v2911_v28, %v2060_v52  ;;  %v2908_v46 = vpop.permute.xlu1 %2907  ;;  %v3050_v16 = vadd.f32 %v3049_v54, %v3035_v37 }
 0x35e   : > { %v2910_v12 = vsel %vm2909_vm3, %v2906_v56, %v2908_v46  ;;  %v2925_v13 = vsel %vm2909_vm3, %v2908_v46, %v4704_v43 }
 0x35f   : > { %v2998_v34 = vmul.f32 %v2966_v3, %v2939_v2  ;;  %3071 = vst [vmem:[%s4716_s15 + $0x68] sm:$0xff] %v2939_v2  ;;  %v2940_v22 = vadd.f32 %v2910_v12, %v2061_v63  ;;  %v2941_v45 = vadd.f32 %v2925_v13, %v2062_v5 }
 0x361   : > { %v3036_v33 = vmul.f32 %v2998_v34, %v2939_v2  ;;  %3072 = vst [vmem:[%s4716_s15 + $0x70] sm:$0xff] %v2940_v22  ;;  %v2999_v25 = vmul.f32 %v2967_v7, %v2940_v22  ;;  %v3000_v59 = vmul.f32 %v2968_v9, %v2941_v45  ;;  %v3014_v1 = vadd.f32 %v3013_v41, %v2998_v34 }
 0x362   : > { %3073 = vst [vmem:[%s4716_s15 + $0x78] sm:$0xff] %v2941_v45 }
 0x363   : > { %v3015_v29 = vadd.f32 %v3014_v1, %v2999_v25  ;;  %v3037_v23 = vmul.f32 %v2999_v25, %v2940_v22  ;;  %v3051_v39 = vadd.f32 %v3050_v16, %v3036_v33  ;;  %v3038_v0 = vmul.f32 %v3000_v59, %v2941_v45 }
 0x365   : > { %v3016_v21 = vadd.f32 %v3015_v29, %v3000_v59  ;;  %v3052_v42 = vadd.f32 %v3051_v39, %v3037_v23 }
 0x367   : > { %3017 = vadd.xlane.f32.xlu2 %v3016_v21  ;;  %v3053_v43 = vadd.f32 %v3052_v42, %v3038_v0 }
 0x369   : > { %3054 = vadd.xlane.f32.xlu0 %v3053_v43 }
 0x36a   : > { %3615 = shalt.err (!%p3612_p13)
}
 0x36b   : > { %3493 = dma.vmem_to_hbm [thread:$0]  (%p3756_p9), %s3130_s10, 2048, %s3132_s11, %s3098_s12   ;;  %v3001_v49 = vld [vmem:[#allocation2] sm:$0xff]  ;;  %v3022_v11 = vld [vmem:[#allocation3] sm:$0xff] }
 0x36c   : > { %p328_p0 = scmp.lt.s32.totalorder %s3662_s21, 1 }
 0x36e   : > { %s4944_s21 = smov (!%p328_p0, %s3662_s21), 1 }
 0x36f   : > { %s3328_s0 = sshll.u32 %s4944_s21, 3 }
 0x370   : > { %s334_s6 = scalar_lea.vmem %s4911_s4, %s3328_s0  ;;  %s341_s29 = scalar_lea.vmem %s4912_s5, %s3328_s0 }
 0x3da   : > { %v3018_v26 = vpop.xlane.xlu2 %3017 }
 0x3db   : > { %v3019_v53 = vadd.f32 %v3018_v26, %v3001_v49 }
 0x3dc   : > { %v3055_v8 = vpop.xlane.xlu0 %3054 }
 0x3dd   : > { %3021 = vst.msk [vmem:[#allocation2] sm:$0xff] %vm2946_vm4, %v3019_v53  ;;  %v3056_v27 = vadd.f32 %v3055_v8, %v3022_v11 }
 0x3df   : > { %3057 = vst.msk [vmem:[#allocation3] sm:$0xff] %vm2946_vm4, %v3056_v27 }
 0x3e4   : > { %v3077_v31 = vld [vmem:[#allocation2] sm:$0xff] }
 0x3e5   : > { %v3078_v44 = vmul.f32 0.00390625, %v3077_v31 }
 0x3e6   : > { %v3079_v20 = vld [vmem:[#allocation3] sm:$0xff] }
 0x3e7   : > { %v3081_v24 = vmul.f32 %v3078_v44, %v3078_v44  ;;  %3084 = vst.msk [vmem:[%s334_s6] sm:$0xff] %vm2946_vm4, %v3078_v44  ;;  %v3080_v60 = vmul.f32 0.00390625, %v3079_v20 }
 0x3e9   : > { %v3082_v10 = vsub.f32 %v3080_v60, %v3081_v24 }
 0x3eb   : > { %v3083_v50 = vmax.f32 %v3082_v10, 0.0 }
 0x3ed   : > { %v3085_v38 = vadd.f32 1e-05, %v3083_v50 }
 0x3ef   : > { %3556 = vrsqrt.f32 %v3085_v38  ;;  %vm3092_vm6 = vweird.f32 %v3085_v38 }
 0x3f5   : > { %v3557_v6 = vpop.eup %3556 }
 0x3f6   : > { %v3087_v61 = vmul.f32 %v3557_v6, %v3085_v38  ;;  %vm3093_vm5 = vweird.f32 %v3557_v6 }
 0x3f7   : > { %vm3094_vm7 = vmor %vm3092_vm6, %vm3093_vm5 }
 0x3f8   : > { %v3088_v40 = vmul.f32 %v3557_v6, %v3087_v61 }
 0x3fa   : > { %v3089_v57 = vmul.f32 0.5, %v3088_v40 }
 0x3fc   : > { %v3090_v35 = vsub.f32 1.5, %v3089_v57 }
 0x3fe   : > { %v3091_v48 = vmul.f32 %v3557_v6, %v3090_v35 }
 0x400   : > { %v3095_v55 = vsel %vm3094_vm7, %v3557_v6, %v3091_v48 }
 0x401   : > { %3096 = vst.msk [vmem:[%s341_s29] sm:$0xff] %vm2946_vm4, %v3095_v55 }
 0x402 PF: > { %s3149_s30 = sand.u32 1, %s3650_s18   ;;  %p3500_p9 = pnand %p3324_p12, %p3763_p11 }
 0x403   : > { %s3150_s9 = scalar_lea.sflag [#allocation6], %s3149_s30 }
 0x404   : > { %p3501_p2 = pneg %p3500_p9 }
 0x406   : > { %3645 = dma.done.wait (%p3501_p2), %s3150_s9, 2048  }
 0x407   : > { %3647 = vsyncadd (%p3501_p2), %s3150_s9, 4294965248  ;;  %s22_s23 = sadd.s32 1, %s3670_s23   ;;  %s4936_s18 = smov %s3654_s19 }
 0x408   : > { %p19_p1 = scmp.ge.s32.totalorder %s22_s23, 4   ;;  %s4937_s19 = smov %s3658_s20 }
 0x409   : > { %s4938_s20 = smov %s3761_s7  ;;  %s4939_s21 = smov %s3666_s22 }
 0x40a   : > { %s4940_s22 = smov %s4942_s26  ;;  %21 = sbr.rel (!%p19_p1) target bundleno = 8 (0x8), region = 132 }
 0x40f   :  { %3176 = vsyncpa [#allocation5], 1 }
 0x410   :  { %3178 = vsyncpa [#allocation5 + $0x1], 1 }
 0x411   :  { %3179 = vsyncpa [#allocation6], 1 }
 0x412   :  { %3181 = vsyncpa [#allocation6 + $0x1], 1 }

</bundles_post_ra>
